<compile_context>
chip_gen: v7x
topology: tpu7x:2x2x1
jax: 0.10.0
libtpu: 0.0.40
codegen_flags: <defaults>
</compile_context>

<pallas_src>
import jax
import jax.numpy as jnp
from jax.experimental import pallas as pl
from jax.experimental.pallas import tpu as pltpu

# Model dims (from the PyTorch module defaults)
INPUT_DIM = 784
HIDDEN_DIM = 400
LATENT_DIM = 20
CONDITION_DIM = 10

# Lane-dense padded dims (multiples of 128)
IN_PAD = 896          # 784 + 10 condition lanes fit inside 896
HID_PAD = 512
LAT_PAD = 128
MUV_PAD = 2 * LAT_PAD  # [mu | logvar] fused head output
C_OFF = 32             # lane offset of the one-hot condition inside the 128-lane latent pad


def _round_up(n, m):
    return ((n + m - 1) // m) * m


def _cvae_kernel(
    # batch-tiled activations
    xc_ref, ce_ref,
    # resident parameters (bf16 weights, f32 biases)
    w1_ref, b1_ref, wmuv_ref, bmuv_ref,
    wd1_ref, bd1_ref, wd2_ref, bd2_ref,
    # outputs
    xrec_ref, muv_ref,
):
    xc = xc_ref[...]                                   # (TM, 896) bf16: [x | c | 0]

    # ---- Encoder fc1 + relu  (cat([x,c]) folded into one matmul) ----
    h = jnp.dot(xc, w1_ref[...], preferred_element_type=jnp.float32) + b1_ref[...]
    h = jnp.maximum(h, 0.0)
    h16 = h.astype(jnp.bfloat16)

    # ---- Fused mu / logvar heads: single (512 x 256) matmul ----
    muv = jnp.dot(h16, wmuv_ref[...], preferred_element_type=jnp.float32) + bmuv_ref[...]
    muv_ref[...] = muv                                  # (TM, 256): [mu_pad | logvar_pad]

    mu = muv[:, :LAT_PAD]                               # real in lanes [0, 20)
    logvar = muv[:, LAT_PAD:]                           # real in lanes [0, 20)

    # ---- Reparameterize + implicit cat([z, c]) ----
    # ce carries eps in lanes [0,20) and the one-hot c in lanes [C_OFF, C_OFF+10).
    # mu/logvar are exactly 0 in padded lanes (zero weight cols / bias pad), so
    # zc = mu + ce*exp(0.5*logvar) gives z in lanes <20 and c in lanes C_OFF..,
    # i.e. exactly the decoder input torch.cat([z, c]) in one 128-lane vector.
    zc = mu + ce_ref[...] * jnp.exp(0.5 * logvar)       # (TM, 128) f32

    # ---- Decoder fc1 + relu ----
    hd = jnp.dot(zc.astype(jnp.bfloat16), wd1_ref[...],
                 preferred_element_type=jnp.float32) + bd1_ref[...]
    hd = jnp.maximum(hd, 0.0)

    # ---- Decoder fc2 + sigmoid ----
    logits = jnp.dot(hd.astype(jnp.bfloat16), wd2_ref[...],
                     preferred_element_type=jnp.float32) + bd2_ref[...]
    xrec_ref[...] = jax.nn.sigmoid(logits)              # (TM, 896) f32


@jax.jit
def conditional_vae_forward(x, c, eps, kp):
    """Fused C-VAE forward.

    x:   (B, 784) f32 flattened image
    c:   (B, 10)  f32 one-hot condition
    eps: (B, 20)  f32 standard normal noise (replaces torch.randn_like)
    kp:  packed/padded kernel params from pack_params()
    Returns (x_recon (B,784), mu (B,20), logvar (B,20)), all f32.
    """
    B = x.shape[0]
    TM = min(256, _round_up(B, 16))        # batch tile (multiple of the bf16 sublane tile)
    B_pad = _round_up(B, TM)
    grid = (B_pad // TM,)

    # Pack [x | c | 0] into one lane-dense bf16 operand.
    xc = jnp.zeros((B_pad, IN_PAD), jnp.bfloat16)
    xc = xc.at[:B, :INPUT_DIM].set(x.astype(jnp.bfloat16))
    xc = xc.at[:B, INPUT_DIM:INPUT_DIM + CONDITION_DIM].set(c.astype(jnp.bfloat16))

    # Pack eps (lanes 0..19) and one-hot c (lanes C_OFF..C_OFF+9) into one f32 operand.
    ce = jnp.zeros((B_pad, LAT_PAD), jnp.float32)
    ce = ce.at[:B, :LATENT_DIM].set(eps)
    ce = ce.at[:B, C_OFF:C_OFF + CONDITION_DIM].set(c)

    def act_spec(feat):
        return pl.BlockSpec((TM, feat), lambda i: (i, 0))

    def res_spec(shape):                   # resident weight/bias: constant block index
        return pl.BlockSpec(shape, lambda i: (0, 0))

    xrec_p, muv_p = pl.pallas_call(
        _cvae_kernel,
        grid=grid,
        out_shape=(
            jax.ShapeDtypeStruct((B_pad, IN_PAD), jnp.float32),   # padded x_recon
            jax.ShapeDtypeStruct((B_pad, MUV_PAD), jnp.float32),  # padded [mu | logvar]
        ),
        in_specs=[
            act_spec(IN_PAD),                 # xc
            act_spec(LAT_PAD),                # ce
            res_spec((IN_PAD, HID_PAD)),      # w1
            res_spec((1, HID_PAD)),           # b1
            res_spec((HID_PAD, MUV_PAD)),     # wmuv
            res_spec((1, MUV_PAD)),           # bmuv
            res_spec((LAT_PAD, HID_PAD)),     # wd1
            res_spec((1, HID_PAD)),           # bd1
            res_spec((HID_PAD, IN_PAD)),      # wd2
            res_spec((1, IN_PAD)),            # bd2
        ],
        out_specs=(act_spec(IN_PAD), act_spec(MUV_PAD)),
        compiler_params=pltpu.CompilerParams(
            dimension_semantics=("parallel",),
            vmem_limit_bytes=32 * 1024 * 1024,
        ),
    )(xc, ce, kp["w1"], kp["b1"], kp["wmuv"], kp["bmuv"],
      kp["wd1"], kp["bd1"], kp["wd2"], kp["bd2"])

    x_recon = xrec_p[:B, :INPUT_DIM]
    mu = muv_p[:B, :LATENT_DIM]
    logvar = muv_p[:B, LAT_PAD:LAT_PAD + LATENT_DIM]
    return x_recon, mu, logvar


def init_params(key):
    """f32 master params in PyTorch nn.Linear semantics, stored as (in, out)."""
    ks = jax.random.split(key, 5)

    def linear(k, fan_in, fan_out):
        kw, kb = jax.random.split(k)
        bound = fan_in ** -0.5
        w = jax.random.uniform(kw, (fan_in, fan_out), jnp.float32, -bound, bound)
        b = jax.random.uniform(kb, (fan_out,), jnp.float32, -bound, bound)
        return w, b

    w1, b1 = linear(ks[0], INPUT_DIM + CONDITION_DIM, HIDDEN_DIM)   # encoder fc1
    wmu, bmu = linear(ks[1], HIDDEN_DIM, LATENT_DIM)                # fc_mu
    wlv, blv = linear(ks[2], HIDDEN_DIM, LATENT_DIM)                # fc_logvar
    wd1, bd1 = linear(ks[3], LATENT_DIM + CONDITION_DIM, HIDDEN_DIM)  # decoder fc1
    wd2, bd2 = linear(ks[4], HIDDEN_DIM, INPUT_DIM)                 # decoder fc2
    return dict(w1=w1, b1=b1, wmu=wmu, bmu=bmu, wlv=wlv, blv=blv,
                wd1=wd1, bd1=bd1, wd2=wd2, bd2=bd2)


def pack_params(p):
    """Zero-pad to lane-dense shapes, fuse heads, cast weights to bf16."""
    f32 = jnp.float32

    w1 = jnp.zeros((IN_PAD, HID_PAD), f32)
    w1 = w1.at[:INPUT_DIM + CONDITION_DIM, :HIDDEN_DIM].set(p["w1"])
    b1 = jnp.zeros((1, HID_PAD), f32).at[0, :HIDDEN_DIM].set(p["b1"])

    wmuv = jnp.zeros((HID_PAD, MUV_PAD), f32)
    wmuv = wmuv.at[:HIDDEN_DIM, :LATENT_DIM].set(p["wmu"])
    wmuv = wmuv.at[:HIDDEN_DIM, LAT_PAD:LAT_PAD + LATENT_DIM].set(p["wlv"])
    bmuv = jnp.zeros((1, MUV_PAD), f32)
    bmuv = bmuv.at[0, :LATENT_DIM].set(p["bmu"])
    bmuv = bmuv.at[0, LAT_PAD:LAT_PAD + LATENT_DIM].set(p["blv"])

    wd1 = jnp.zeros((LAT_PAD, HID_PAD), f32)
    wd1 = wd1.at[:LATENT_DIM, :HIDDEN_DIM].set(p["wd1"][:LATENT_DIM])            # z rows
    wd1 = wd1.at[C_OFF:C_OFF + CONDITION_DIM, :HIDDEN_DIM].set(p["wd1"][LATENT_DIM:])  # c rows
    bd1 = jnp.zeros((1, HID_PAD), f32).at[0, :HIDDEN_DIM].set(p["bd1"])

    wd2 = jnp.zeros((HID_PAD, IN_PAD), f32)
    wd2 = wd2.at[:HIDDEN_DIM, :INPUT_DIM].set(p["wd2"])
    bd2 = jnp.zeros((1, IN_PAD), f32).at[0, :INPUT_DIM].set(p["bd2"])

    bf16 = jnp.bfloat16
    return dict(w1=w1.astype(bf16), b1=b1,
                wmuv=wmuv.astype(bf16), bmuv=bmuv,
                wd1=wd1.astype(bf16), bd1=bd1,
                wd2=wd2.astype(bf16), bd2=bd2)


def reference_forward(x, c, eps, p):
    """Pure-JAX f32 reference matching the PyTorch semantics exactly."""
    xc = jnp.concatenate([x, c], axis=1)
    h = jax.nn.relu(xc @ p["w1"] + p["b1"])
    mu = h @ p["wmu"] + p["bmu"]
    logvar = h @ p["wlv"] + p["blv"]
    z = mu + eps * jnp.exp(0.5 * logvar)
    zc = jnp.concatenate([z, c], axis=1)
    hd = jax.nn.relu(zc @ p["wd1"] + p["bd1"])
    x_recon = jax.nn.sigmoid(hd @ p["wd2"] + p["bd2"])
    return x_recon, mu, logvar


if __name__ == "__main__":
    key = jax.random.PRNGKey(0)
    k_params, k_x, k_c, k_eps = jax.random.split(key, 4)

    B = 8  # small batch
    params = init_params(k_params)
    kparams = pack_params(params)

    x = jax.random.uniform(k_x, (B, INPUT_DIM), jnp.float32)        # flattened image
    labels = jax.random.randint(k_c, (B,), 0, CONDITION_DIM)
    c = jax.nn.one_hot(labels, CONDITION_DIM, dtype=jnp.float32)    # one-hot condition
    eps = jax.random.normal(k_eps, (B, LATENT_DIM), jnp.float32)    # randn_like replacement

    x_recon, mu, logvar = jax.block_until_ready(
        conditional_vae_forward(x, c, eps, kparams)
    )

    # Correctness vs pure-f32 JAX reference (kernel uses bf16 weights with f32
    # accumulation, so allow a small absolute tolerance).
    xr_ref, mu_ref, lv_ref = reference_forward(x, c, eps, params)
    assert x_recon.shape == (B, INPUT_DIM)
    assert mu.shape == (B, LATENT_DIM) and logvar.shape == (B, LATENT_DIM)
    assert float(jnp.max(jnp.abs(x_recon - xr_ref))) < 2e-2
    assert float(jnp.max(jnp.abs(mu - mu_ref))) < 2e-2
    assert float(jnp.max(jnp.abs(logvar - lv_ref))) < 2e-2

    print("KERNEL_OK")
</pallas_src>

<mosaic_0001>
module attributes {stable_mosaic.version = 11 : i64} {
  func.func @_cvae_kernel(%arg0: i32, %arg1: memref<16x896xbf16, #tpu.memory_space<vmem>>, %arg2: memref<16x128xf32, #tpu.memory_space<vmem>>, %arg3: memref<896x512xbf16, #tpu.memory_space<vmem>>, %arg4: memref<1x512xf32, #tpu.memory_space<vmem>>, %arg5: memref<512x256xbf16, #tpu.memory_space<vmem>>, %arg6: memref<1x256xf32, #tpu.memory_space<vmem>>, %arg7: memref<128x512xbf16, #tpu.memory_space<vmem>>, %arg8: memref<1x512xf32, #tpu.memory_space<vmem>>, %arg9: memref<512x896xbf16, #tpu.memory_space<vmem>>, %arg10: memref<1x896xf32, #tpu.memory_space<vmem>>, %arg11: memref<16x896xf32, #tpu.memory_space<vmem>>, %arg12: memref<16x256xf32, #tpu.memory_space<vmem>>) attributes {dimension_semantics = [#tpu.dimension_semantics<parallel>], iteration_bounds = array<i64: 1>, scalar_prefetch = 0 : i64, scratch_operands = 0 : i64, tpu.core_type = #tpu.core_type<tc>, window_params = [{transform_indices = @transform_0, window_bounds = array<i64: 16, 896>}, {transform_indices = @transform_1, window_bounds = array<i64: 16, 128>}, {pipeline_mode = #tpu.pipeline_mode<synchronous>, transform_indices = @transform_2, window_bounds = array<i64: 896, 512>}, {pipeline_mode = #tpu.pipeline_mode<synchronous>, transform_indices = @transform_3, window_bounds = array<i64: 1, 512>}, {pipeline_mode = #tpu.pipeline_mode<synchronous>, transform_indices = @transform_4, window_bounds = array<i64: 512, 256>}, {pipeline_mode = #tpu.pipeline_mode<synchronous>, transform_indices = @transform_5, window_bounds = array<i64: 1, 256>}, {pipeline_mode = #tpu.pipeline_mode<synchronous>, transform_indices = @transform_6, window_bounds = array<i64: 128, 512>}, {pipeline_mode = #tpu.pipeline_mode<synchronous>, transform_indices = @transform_7, window_bounds = array<i64: 1, 512>}, {pipeline_mode = #tpu.pipeline_mode<synchronous>, transform_indices = @transform_8, window_bounds = array<i64: 512, 896>}, {pipeline_mode = #tpu.pipeline_mode<synchronous>, transform_indices = @transform_9, window_bounds = array<i64: 1, 896>}, {transform_indices = @transform_10, window_bounds = array<i64: 16, 896>}, {transform_indices = @transform_11, window_bounds = array<i64: 16, 256>}]} {
    %c0 = arith.constant 0 : index
    %c0_0 = arith.constant 0 : index
    %0 = vector.load %arg1[%c0, %c0_0] : memref<16x896xbf16, #tpu.memory_space<vmem>>, vector<16x896xbf16>
    %c0_1 = arith.constant 0 : index
    %c0_2 = arith.constant 0 : index
    %1 = vector.load %arg3[%c0_1, %c0_2] : memref<896x512xbf16, #tpu.memory_space<vmem>>, vector<896x512xbf16>
    %cst = arith.constant dense<0.000000e+00> : vector<16x512xf32>
    %2 = tpu.matmul %0, %1, %cst {dimension_numbers = #tpu.dot_dimension_numbers<[1], [0], [0], [1], [0, 0, 1, 1], [], []>} : vector<16x896xbf16>, vector<896x512xbf16>, vector<16x512xf32> -> vector<16x512xf32>
    %c0_3 = arith.constant 0 : index
    %c0_4 = arith.constant 0 : index
    %3 = vector.load %arg4[%c0_3, %c0_4] : memref<1x512xf32, #tpu.memory_space<vmem>>, vector<1x512xf32>
    %4 = vector.broadcast %3 : vector<1x512xf32> to vector<16x512xf32>
    %5 = arith.addf %2, %4 : vector<16x512xf32>
    %cst_5 = arith.constant 0.000000e+00 : f32
    %6 = vector.broadcast %cst_5 : f32 to vector<16x512xf32>
    %7 = arith.maximumf %5, %6 : vector<16x512xf32>
    %8 = arith.truncf %7 : vector<16x512xf32> to vector<16x512xbf16>
    %c0_6 = arith.constant 0 : index
    %c0_7 = arith.constant 0 : index
    %9 = vector.load %arg5[%c0_6, %c0_7] : memref<512x256xbf16, #tpu.memory_space<vmem>>, vector<512x256xbf16>
    %cst_8 = arith.constant dense<0.000000e+00> : vector<16x256xf32>
    %10 = tpu.matmul %8, %9, %cst_8 {dimension_numbers = #tpu.dot_dimension_numbers<[1], [0], [0], [1], [0, 0, 1, 1], [], []>} : vector<16x512xbf16>, vector<512x256xbf16>, vector<16x256xf32> -> vector<16x256xf32>
    %c0_9 = arith.constant 0 : index
    %c0_10 = arith.constant 0 : index
    %11 = vector.load %arg6[%c0_9, %c0_10] : memref<1x256xf32, #tpu.memory_space<vmem>>, vector<1x256xf32>
    %12 = vector.broadcast %11 : vector<1x256xf32> to vector<16x256xf32>
    %13 = arith.addf %10, %12 : vector<16x256xf32>
    %c0_11 = arith.constant 0 : index
    %c0_12 = arith.constant 0 : index
    %14 = vector.load %arg12[%c0_11, %c0_12] : memref<16x256xf32, #tpu.memory_space<vmem>>, vector<16x256xf32>
    tpu.vector_store %arg12[%c0_11, %c0_12], %13 {strides = array<i32>} : memref<16x256xf32, #tpu.memory_space<vmem>>, vector<16x256xf32>,
    %15 = vector.extract_strided_slice %13 {offsets = [0, 0], sizes = [16, 128], strides = [1, 1]} : vector<16x256xf32> to vector<16x128xf32>
    %16 = vector.extract_strided_slice %13 {offsets = [0, 128], sizes = [16, 128], strides = [1, 1]} : vector<16x256xf32> to vector<16x128xf32>
    %c0_13 = arith.constant 0 : index
    %c0_14 = arith.constant 0 : index
    %17 = vector.load %arg2[%c0_13, %c0_14] : memref<16x128xf32, #tpu.memory_space<vmem>>, vector<16x128xf32>
    %cst_15 = arith.constant 5.000000e-01 : f32
    %18 = vector.broadcast %cst_15 : f32 to vector<16x128xf32>
    %19 = arith.mulf %18, %16 : vector<16x128xf32>
    %20 = math.exp %19 : vector<16x128xf32>
    %21 = arith.mulf %17, %20 : vector<16x128xf32>
    %22 = arith.addf %15, %21 : vector<16x128xf32>
    %23 = arith.truncf %22 : vector<16x128xf32> to vector<16x128xbf16>
    %c0_16 = arith.constant 0 : index
    %c0_17 = arith.constant 0 : index
    %24 = vector.load %arg7[%c0_16, %c0_17] : memref<128x512xbf16, #tpu.memory_space<vmem>>, vector<128x512xbf16>
    %cst_18 = arith.constant dense<0.000000e+00> : vector<16x512xf32>
    %25 = tpu.matmul %23, %24, %cst_18 {dimension_numbers = #tpu.dot_dimension_numbers<[1], [0], [0], [1], [0, 0, 1, 1], [], []>} : vector<16x128xbf16>, vector<128x512xbf16>, vector<16x512xf32> -> vector<16x512xf32>
    %c0_19 = arith.constant 0 : index
    %c0_20 = arith.constant 0 : index
    %26 = vector.load %arg8[%c0_19, %c0_20] : memref<1x512xf32, #tpu.memory_space<vmem>>, vector<1x512xf32>
    %27 = vector.broadcast %26 : vector<1x512xf32> to vector<16x512xf32>
    %28 = arith.addf %25, %27 : vector<16x512xf32>
    %cst_21 = arith.constant 0.000000e+00 : f32
    %29 = vector.broadcast %cst_21 : f32 to vector<16x512xf32>
    %30 = arith.maximumf %28, %29 : vector<16x512xf32>
    %31 = arith.truncf %30 : vector<16x512xf32> to vector<16x512xbf16>
    %c0_22 = arith.constant 0 : index
    %c0_23 = arith.constant 0 : index
    %32 = vector.load %arg9[%c0_22, %c0_23] : memref<512x896xbf16, #tpu.memory_space<vmem>>, vector<512x896xbf16>
    %cst_24 = arith.constant dense<0.000000e+00> : vector<16x896xf32>
    %33 = tpu.matmul %31, %32, %cst_24 {dimension_numbers = #tpu.dot_dimension_numbers<[1], [0], [0], [1], [0, 0, 1, 1], [], []>} : vector<16x512xbf16>, vector<512x896xbf16>, vector<16x896xf32> -> vector<16x896xf32>
    %c0_25 = arith.constant 0 : index
    %c0_26 = arith.constant 0 : index
    %34 = vector.load %arg10[%c0_25, %c0_26] : memref<1x896xf32, #tpu.memory_space<vmem>>, vector<1x896xf32>
    %35 = vector.broadcast %34 : vector<1x896xf32> to vector<16x896xf32>
    %36 = arith.addf %33, %35 : vector<16x896xf32>
    %37 = arith.negf %36 : vector<16x896xf32>
    %38 = math.exp %37 : vector<16x896xf32>
    %cst_27 = arith.constant 1.000000e+00 : f32
    %39 = vector.broadcast %cst_27 : f32 to vector<16x896xf32>
    %40 = arith.addf %39, %38 : vector<16x896xf32>
    %41 = arith.divf %39, %40 : vector<16x896xf32>
    %c0_28 = arith.constant 0 : index
    %c0_29 = arith.constant 0 : index
    %42 = vector.load %arg11[%c0_28, %c0_29] : memref<16x896xf32, #tpu.memory_space<vmem>>, vector<16x896xf32>
    tpu.vector_store %arg11[%c0_28, %c0_29], %41 {strides = array<i32>} : memref<16x896xf32, #tpu.memory_space<vmem>>, vector<16x896xf32>,
    return
  }
  func.func @transform_0(%arg0: i32) -> (i32, i32) {
    %c0_i32 = arith.constant 0 : i32
    %c0_i32_0 = arith.constant 0 : i32
    return %arg0, %c0_i32 : i32, i32
  }
  func.func @transform_1(%arg0: i32) -> (i32, i32) {
    %c0_i32 = arith.constant 0 : i32
    %c0_i32_0 = arith.constant 0 : i32
    return %arg0, %c0_i32 : i32, i32
  }
  func.func @transform_2(%arg0: i32) -> (i32, i32) {
    %c0_i32 = arith.constant 0 : i32
    %c0_i32_0 = arith.constant 0 : i32
    %c0_i32_1 = arith.constant 0 : i32
    return %c0_i32, %c0_i32_0 : i32, i32
  }
  func.func @transform_3(%arg0: i32) -> (i32, i32) {
    %c0_i32 = arith.constant 0 : i32
    %c0_i32_0 = arith.constant 0 : i32
    %c0_i32_1 = arith.constant 0 : i32
    return %c0_i32, %c0_i32_0 : i32, i32
  }
  func.func @transform_4(%arg0: i32) -> (i32, i32) {
    %c0_i32 = arith.constant 0 : i32
    %c0_i32_0 = arith.constant 0 : i32
    %c0_i32_1 = arith.constant 0 : i32
    return %c0_i32, %c0_i32_0 : i32, i32
  }
  func.func @transform_5(%arg0: i32) -> (i32, i32) {
    %c0_i32 = arith.constant 0 : i32
    %c0_i32_0 = arith.constant 0 : i32
    %c0_i32_1 = arith.constant 0 : i32
    return %c0_i32, %c0_i32_0 : i32, i32
  }
  func.func @transform_6(%arg0: i32) -> (i32, i32) {
    %c0_i32 = arith.constant 0 : i32
    %c0_i32_0 = arith.constant 0 : i32
    %c0_i32_1 = arith.constant 0 : i32
    return %c0_i32, %c0_i32_0 : i32, i32
  }
  func.func @transform_7(%arg0: i32) -> (i32, i32) {
    %c0_i32 = arith.constant 0 : i32
    %c0_i32_0 = arith.constant 0 : i32
    %c0_i32_1 = arith.constant 0 : i32
    return %c0_i32, %c0_i32_0 : i32, i32
  }
  func.func @transform_8(%arg0: i32) -> (i32, i32) {
    %c0_i32 = arith.constant 0 : i32
    %c0_i32_0 = arith.constant 0 : i32
    %c0_i32_1 = arith.constant 0 : i32
    return %c0_i32, %c0_i32_0 : i32, i32
  }
  func.func @transform_9(%arg0: i32) -> (i32, i32) {
    %c0_i32 = arith.constant 0 : i32
    %c0_i32_0 = arith.constant 0 : i32
    %c0_i32_1 = arith.constant 0 : i32
    return %c0_i32, %c0_i32_0 : i32, i32
  }
  func.func @transform_10(%arg0: i32) -> (i32, i32) {
    %c0_i32 = arith.constant 0 : i32
    %c0_i32_0 = arith.constant 0 : i32
    return %arg0, %c0_i32 : i32, i32
  }
  func.func @transform_11(%arg0: i32) -> (i32, i32) {
    %c0_i32 = arith.constant 0 : i32
    %c0_i32_0 = arith.constant 0 : i32
    return %arg0, %c0_i32 : i32, i32
  }
}

</mosaic_0001>

<bundles_post_ra>
// kernel: conditional_vae_forward.1
= control target key start
LH: loop header
LB: loop body
LE: loop exit
PB: predicated region body
PF: predicated region fallthrough
CT: control target
= control target key end

     0   :  { %17 = vsyncpa [#allocation3], 0  ;;  %s6544_s0 = inlined_call_operand.vmem [shape: bf16[16,896], index: 0, kind: input, shape index: {}]   ;;  %s6545_s1 = inlined_call_operand.vmem [shape: f32[16,128], index: 1, kind: input, shape index: {}]   ;;  %s6546_s2 = inlined_call_operand.hbm [shape: bf16[896,512], index: 2, kind: input, shape index: {}]   ;;  %s6547_s3 = inlined_call_operand.vmem [shape: f32[1,512], index: 3, kind: input, shape index: {}]   ;;  %s6548_s4 = inlined_call_operand.hbm [shape: bf16[512,256], index: 4, kind: input, shape index: {}]   ;;  %s6549_s5 = inlined_call_operand.vmem [shape: f32[1,256], index: 5, kind: input, shape index: {}]   ;;  %s6550_s6 = inlined_call_operand.vmem [shape: bf16[128,512], index: 6, kind: input, shape index: {}]   ;;  %s6551_s7 = inlined_call_operand.vmem [shape: f32[1,512], index: 7, kind: input, shape index: {}]   ;;  %s6552_s8 = inlined_call_operand.hbm [shape: bf16[512,896], index: 8, kind: input, shape index: {}]   ;;  %s6553_s9 = inlined_call_operand.vmem [shape: f32[1,896], index: 9, kind: input, shape index: {}]   ;;  %s6554_s10 = inlined_call_operand.vmem [shape: f32[16,896], index: 10, kind: output, shape index: {0}]   ;;  %s6555_s11 = inlined_call_operand.vmem [shape: f32[16,256], index: 11, kind: output, shape index: {1}]  }
   0x1   :  { %18 = vsyncpa [#allocation5], 0  ;;  %s6172_s17 = smov [#allocation4]   ;;  %s6102_s21 = scalar_lea.hbm %s6548_s4, 8192 }
   0x2   :  { %s42_s18 = sshll.u32 %s6172_s17, 4  ;;  %p6103_p0 = scmp.ne.s32.totalorder %s6548_s4, %s6102_s21  ;;  %s43_s18 = int_to_ptr.vmem [resolvable:$true] %s42_s18 }
   0x3   :  { %p6106_p1 = scmp.lt.u32.totalorder %s6102_s21, %s6548_s4 }
   0x5   :  { %p6108_p2 = pnand %p6106_p1, %p6103_p0 }
   0x7   :  { %6111 = shalt.err (!%p6108_p2)
}
   0x8   :  { %s6112_s26 = scalar_lea.vmem %s43_s18, 8192  ;;  %p6117_p4 = scmp.lt.s32.totalorder %s43_s18, %s43_s18 }
   0x9   :  { %p6113_p3 = scmp.ne.s32.totalorder %s43_s18, %s6112_s26  ;;  %p6118_p5 = scmp.lt.s32.totalorder %s6112_s26, %s6112_s26 }
   0xb   :  { %p6119_p6 = por %p6118_p5, %p6117_p4 }
   0xd   :  { %p6120_p7 = pnand %p6119_p6, %p6113_p3 }
   0xf   :  { %6123 = shalt.err (!%p6120_p7)
}
  0x10   :  { %s6173_s27 = smov 128   ;;  %s6174_s28 = smov 8  }
  0x11   :  { %48 = dma.hbm_to_vmem [thread:$0]  %s6548_s4, 8192, %s43_s18, [#allocation5], %s6173_s27, %s6173_s27, %s6174_s28  }
  0x12   :  { %s6175_s12 = smov [#allocation2]   ;;  %s6124_s16 = scalar_lea.hbm %s6546_s2, 28672 }
  0x13   :  { %s28_s13 = sshll.u32 %s6175_s12, 4  ;;  %p6125_p8 = scmp.ne.s32.totalorder %s6546_s2, %s6124_s16  ;;  %s29_s13 = int_to_ptr.vmem [resolvable:$true] %s28_s13 }
  0x14   :  { %p6128_p9 = scmp.lt.u32.totalorder %s6124_s16, %s6546_s2 }
  0x16   :  { %p6130_p10 = pnand %p6128_p9, %p6125_p8 }
  0x18   :  { %6133 = shalt.err (!%p6130_p10)
}
  0x19   :  { %s6134_s22 = scalar_lea.vmem %s29_s13, 28672  ;;  %p6139_p12 = scmp.lt.s32.totalorder %s29_s13, %s29_s13 }
  0x1a   :  { %p6135_p11 = scmp.ne.s32.totalorder %s29_s13, %s6134_s22  ;;  %p6140_p13 = scmp.lt.s32.totalorder %s6134_s22, %s6134_s22 }
  0x1c   :  { %p6141_p0 = por %p6140_p13, %p6139_p12 }
  0x1e   :  { %p6142_p1 = pnand %p6141_p0, %p6135_p11 }
  0x20   :  { %6145 = shalt.err (!%p6142_p1)
}
  0x21   :  { %s6176_s4 = smov 256   ;;  %s6177_s18 = smov 16  }
  0x22   :  { %34 = dma.hbm_to_vmem [thread:$0]  %s6546_s2, 28672, %s29_s13, [#allocation3], %s6176_s4, %s6176_s4, %s6177_s18  }
  0x23   :  { %s6178_s25 = smov [#allocation6]   ;;  %s6146_s29 = scalar_lea.hbm %s6552_s8, 28672 }
  0x24   :  { %s60_s26 = sshll.u32 %s6178_s25, 4  ;;  %p6147_p2 = scmp.ne.s32.totalorder %s6552_s8, %s6146_s29  ;;  %s61_s26 = int_to_ptr.vmem [resolvable:$true] %s60_s26 }
  0x25   :  { %p6150_p3 = scmp.lt.u32.totalorder %s6146_s29, %s6552_s8 }
  0x27   :  { %p6152_p4 = pnand %p6150_p3, %p6147_p2 }
  0x29   :  { %6155 = shalt.err (!%p6152_p4)
}
  0x2a   :  { %s6156_s16 = scalar_lea.vmem %s61_s26, 28672  ;;  %p6161_p6 = scmp.lt.s32.totalorder %s61_s26, %s61_s26 }
  0x2b   :  { %p6157_p5 = scmp.ne.s32.totalorder %s61_s26, %s6156_s16  ;;  %p6162_p7 = scmp.lt.s32.totalorder %s6156_s16, %s6156_s16 }
  0x2d   :  { %p6163_p8 = por %p6162_p7, %p6161_p6 }
  0x2f   :  { %p6164_p9 = pnand %p6163_p8, %p6157_p5 }
  0x31   :  { %6167 = shalt.err (!%p6164_p9)
}
  0x32   :  { %s6179_s2 = smov 448   ;;  %s6180_s13 = smov 28  }
  0x33   :  { %66 = dma.hbm_to_vmem [thread:$0]  %s6552_s8, 28672, %s61_s26, [#allocation5], %s6179_s2, %s6179_s2, %s6180_s13  }
  0x34   :  { %6168 = dma.done.wait [#allocation3], 28672  }
  0x35   :  { %6169 = vsyncadd [#allocation3], 4294938624 }
  0x36   :  { %6170 = dma.done.wait [#allocation5], 36864  }
  0x37   :  { %6171 = vsyncadd [#allocation5], 4294930432  ;;  %v5232_v0 = vld [vmem:[#allocation2 + $0x4] ss:$16 sps:$4 sm:$0xff]   ;;  %v5234_v1 = vld [vmem:[#allocation2 + $0xc] ss:$16 sps:$4 sm:$0xff]  }
  0x38   :  { %1489 = vmatprep.subr.bf16.mxu0 %v5232_v0  ;;  %v5236_v2 = vld [vmem:[#allocation2] ss:$16 sps:$4 sm:$0xff]   ;;  %v5237_v3 = vld [vmem:[#allocation2 + $0x8] ss:$16 sps:$4 sm:$0xff]   ;;  %1661 = vmatprep.subr.bf16.mxu1 %v5234_v1  ;;  %v5238_v4 = vld [vmem:[#allocation2 + $0x24] ss:$16 sps:$4 sm:$0xff]  }
  0x39   :  { %1490 = vmatpush1.bf16.msra.mxu0 %v5236_v2  ;;  %1662 = vmatpush1.bf16.msra.mxu1 %v5237_v3  ;;  %v5240_v5 = vld [vmem:[#allocation2 + $0x2c] ss:$16 sps:$4 sm:$0xff]   ;;  %v5242_v6 = vld [vmem:[#allocation2 + $0x20] ss:$16 sps:$4 sm:$0xff]   ;;  %v5243_v7 = vld [vmem:[#allocation2 + $0x28] ss:$16 sps:$4 sm:$0xff]  }
  0x3a   :  { %1491 = vmatprep.subr.bf16.mxu0 %v5238_v4  ;;  %1663 = vmatprep.subr.bf16.mxu1 %v5240_v5  ;;  %v5244_v8 = vld [vmem:[#allocation2 + $0x44] ss:$16 sps:$4 sm:$0xff]   ;;  %v5246_v9 = vld [vmem:[#allocation2 + $0x4c] ss:$16 sps:$4 sm:$0xff]   ;;  %v5248_v10 = vld [vmem:[#allocation2 + $0x40] ss:$16 sps:$4 sm:$0xff]  }
  0x3b   :  { %v5249_v11 = vld [vmem:[#allocation2 + $0x48] ss:$16 sps:$4 sm:$0xff]   ;;  %v5250_v12 = vld [vmem:[#allocation2 + $0x64] ss:$16 sps:$4 sm:$0xff]   ;;  %v5252_v13 = vld [vmem:[#allocation2 + $0x6c] ss:$16 sps:$4 sm:$0xff]  }
  0x3c   :  { %v5254_v14 = vld [vmem:[#allocation2 + $0x60] ss:$16 sps:$4 sm:$0xff]   ;;  %v5255_v15 = vld [vmem:[#allocation2 + $0x68] ss:$16 sps:$4 sm:$0xff]   ;;  %v5256_v16 = vld [vmem:[#allocation2 + $0x84] ss:$16 sps:$4 sm:$0xff]  }
  0x3d   :  { %1492 = vmatpush1.bf16.msra.mxu0 %v5242_v6  ;;  %1664 = vmatpush1.bf16.msra.mxu1 %v5243_v7  ;;  %v5258_v17 = vld [vmem:[#allocation2 + $0x8c] ss:$16 sps:$4 sm:$0xff]   ;;  %v5260_v18 = vld [vmem:[#allocation2 + $0x80] ss:$16 sps:$4 sm:$0xff]   ;;  %v5261_v19 = vld [vmem:[#allocation2 + $0x88] ss:$16 sps:$4 sm:$0xff]  }
  0x3e   :  { %1493 = vmatprep.subr.bf16.mxu0 %v5244_v8  ;;  %1665 = vmatprep.subr.bf16.mxu1 %v5246_v9  ;;  %v5262_v20 = vld [vmem:[#allocation2 + $0xa4] ss:$16 sps:$4 sm:$0xff]   ;;  %v5264_v21 = vld [vmem:[#allocation2 + $0xac] ss:$16 sps:$4 sm:$0xff]   ;;  %v5266_v22 = vld [vmem:[#allocation2 + $0xa0] ss:$16 sps:$4 sm:$0xff]  }
  0x3f   :  { %v5267_v23 = vld [vmem:[#allocation2 + $0xa8] ss:$16 sps:$4 sm:$0xff]   ;;  %v5268_v24 = vld [vmem:[#allocation2 + $0xc4] ss:$16 sps:$4 sm:$0xff]   ;;  %v5270_v25 = vld [vmem:[#allocation2 + $0xcc] ss:$16 sps:$4 sm:$0xff]  }
  0x40   :  { %v5272_v26 = vld [vmem:[#allocation2 + $0xc0] ss:$16 sps:$4 sm:$0xff]   ;;  %v5273_v27 = vld [vmem:[#allocation2 + $0xc8] ss:$16 sps:$4 sm:$0xff]   ;;  %v5274_v28 = vld [vmem:[#allocation2 + $0xe4] ss:$16 sps:$4 sm:$0xff]  }
  0x41   :  { %1494 = vmatpush1.bf16.msra.mxu0 %v5248_v10  ;;  %1666 = vmatpush1.bf16.msra.mxu1 %v5249_v11  ;;  %v5276_v29 = vld [vmem:[#allocation2 + $0xec] ss:$16 sps:$4 sm:$0xff]   ;;  %v5278_v30 = vld [vmem:[#allocation2 + $0xe0] ss:$16 sps:$4 sm:$0xff]   ;;  %v5279_v31 = vld [vmem:[#allocation2 + $0xe8] ss:$16 sps:$4 sm:$0xff]  }
  0x42   :  { %1495 = vmatprep.subr.bf16.mxu0 %v5250_v12  ;;  %1667 = vmatprep.subr.bf16.mxu1 %v5252_v13  ;;  %v5280_v32 = vld [vmem:[#allocation2 + $0x104] ss:$16 sps:$4 sm:$0xff]   ;;  %v5282_v33 = vld [vmem:[#allocation2 + $0x10c] ss:$16 sps:$4 sm:$0xff]   ;;  %v5284_v34 = vld [vmem:[#allocation2 + $0x100] ss:$16 sps:$4 sm:$0xff]  }
  0x43   :  { %v5285_v35 = vld [vmem:[#allocation2 + $0x108] ss:$16 sps:$4 sm:$0xff]   ;;  %v5286_v36 = vld [vmem:[#allocation2 + $0x124] ss:$16 sps:$4 sm:$0xff]   ;;  %v5288_v37 = vld [vmem:[#allocation2 + $0x12c] ss:$16 sps:$4 sm:$0xff]  }
  0x44   :  { %v5290_v38 = vld [vmem:[#allocation2 + $0x120] ss:$16 sps:$4 sm:$0xff]   ;;  %v5291_v39 = vld [vmem:[#allocation2 + $0x128] ss:$16 sps:$4 sm:$0xff]   ;;  %v5292_v40 = vld [vmem:[#allocation2 + $0x144] ss:$16 sps:$4 sm:$0xff]  }
  0x45   :  { %1496 = vmatpush1.bf16.msra.mxu0 %v5254_v14  ;;  %1668 = vmatpush1.bf16.msra.mxu1 %v5255_v15  ;;  %v5294_v41 = vld [vmem:[#allocation2 + $0x14c] ss:$16 sps:$4 sm:$0xff]   ;;  %v5296_v42 = vld [vmem:[#allocation2 + $0x140] ss:$16 sps:$4 sm:$0xff]   ;;  %v5297_v43 = vld [vmem:[#allocation2 + $0x148] ss:$16 sps:$4 sm:$0xff]  }
  0x46   :  { %1497 = vmatprep.subr.bf16.mxu0 %v5256_v16  ;;  %1669 = vmatprep.subr.bf16.mxu1 %v5258_v17  ;;  %v5298_v44 = vld [vmem:[#allocation2 + $0x164] ss:$16 sps:$4 sm:$0xff]   ;;  %v5300_v45 = vld [vmem:[#allocation2 + $0x16c] ss:$16 sps:$4 sm:$0xff]   ;;  %v5302_v46 = vld [vmem:[#allocation2 + $0x160] ss:$16 sps:$4 sm:$0xff]  }
  0x47   :  { %v5303_v47 = vld [vmem:[#allocation2 + $0x168] ss:$16 sps:$4 sm:$0xff]   ;;  %v5330_v48 = vld [vmem:[%s6544_s0 + $0x4] ss:$28 sps:$4 sm:$0xff]   ;;  %v5306_v50 = vld [vmem:[#allocation2 + $0x18c] ss:$16 sps:$4 sm:$0xff]  }
  0x48   :  { %v5304_v49 = vld [vmem:[#allocation2 + $0x184] ss:$16 sps:$4 sm:$0xff]   ;;  %1521 = vmatprep.mubr.bf16.mxu0 %v5330_v48  ;;  %1693 = vmatprep.mubr.bf16.mxu1 %v5330_v48  ;;  %v5308_v51 = vld [vmem:[#allocation2 + $0x180] ss:$16 sps:$4 sm:$0xff]   ;;  %v5309_v52 = vld [vmem:[#allocation2 + $0x188] ss:$16 sps:$4 sm:$0xff]  }
  0x49   :  { %1498 = vmatpush1.bf16.msra.mxu0 %v5260_v18  ;;  %1670 = vmatpush1.bf16.msra.mxu1 %v5261_v19  ;;  %v5310_v53 = vld [vmem:[#allocation2 + $0x1a4] ss:$16 sps:$4 sm:$0xff]   ;;  %v5312_v54 = vld [vmem:[#allocation2 + $0x1ac] ss:$16 sps:$4 sm:$0xff]   ;;  %v5314_v55 = vld [vmem:[#allocation2 + $0x1a0] ss:$16 sps:$4 sm:$0xff]  }
  0x4a   :  { %1499 = vmatprep.subr.bf16.mxu0 %v5262_v20  ;;  %1671 = vmatprep.subr.bf16.mxu1 %v5264_v21  ;;  %v5315_v56 = vld [vmem:[#allocation2 + $0x1a8] ss:$16 sps:$4 sm:$0xff]   ;;  %v5316_v57 = vld [vmem:[#allocation2 + $0x1c4] ss:$16 sps:$4 sm:$0xff]   ;;  %v5318_v58 = vld [vmem:[#allocation2 + $0x1cc] ss:$16 sps:$4 sm:$0xff]  }
  0x4b   :  { %v5320_v59 = vld [vmem:[#allocation2 + $0x1c0] ss:$16 sps:$4 sm:$0xff]   ;;  %v5321_v60 = vld [vmem:[#allocation2 + $0x1c8] ss:$16 sps:$4 sm:$0xff]   ;;  %v5322_v61 = vld [vmem:[#allocation2 + $0x1e4] ss:$16 sps:$4 sm:$0xff]  }
  0x4c   :  { %v5324_v62 = vld [vmem:[#allocation2 + $0x1ec] ss:$16 sps:$4 sm:$0xff]   ;;  %v5326_v63 = vld [vmem:[#allocation2 + $0x1e0] ss:$16 sps:$4 sm:$0xff]   ;;  %v5327_v0 = vld [vmem:[#allocation2 + $0x1e8] ss:$16 sps:$4 sm:$0xff]  }
  0x4d   :  { %1500 = vmatpush1.bf16.msra.mxu0 %v5266_v22  ;;  %1672 = vmatpush1.bf16.msra.mxu1 %v5267_v23  ;;  %v5333_v1 = vld [vmem:[#allocation2 + $0x204] ss:$16 sps:$4 sm:$0xff]   ;;  %v5336_v2 = vld [vmem:[#allocation2 + $0x20c] ss:$16 sps:$4 sm:$0xff]   ;;  %v5331_v4 = vld [vmem:[#allocation2 + $0x200] ss:$16 sps:$4 sm:$0xff]  }
  0x4e   :  { %1501 = vmatprep.subr.bf16.mxu0 %v5268_v24  ;;  %1673 = vmatprep.subr.bf16.mxu1 %v5270_v25  ;;  %v5328_v3 = vld [vmem:[%s6544_s0] ss:$28 sps:$4 sm:$0xff]   ;;  %v5334_v5 = vld [vmem:[#allocation2 + $0x208] ss:$16 sps:$4 sm:$0xff]   ;;  %v5339_v6 = vld [vmem:[#allocation2 + $0x224] ss:$16 sps:$4 sm:$0xff]  }
  0x4f   :  { %v5342_v7 = vld [vmem:[#allocation2 + $0x22c] ss:$16 sps:$4 sm:$0xff]   ;;  %v5337_v8 = vld [vmem:[#allocation2 + $0x220] ss:$16 sps:$4 sm:$0xff]   ;;  %v5340_v9 = vld [vmem:[#allocation2 + $0x228] ss:$16 sps:$4 sm:$0xff]  }
  0x50   :  { %v5345_v10 = vld [vmem:[#allocation2 + $0x244] ss:$16 sps:$4 sm:$0xff]   ;;  %v5348_v11 = vld [vmem:[#allocation2 + $0x24c] ss:$16 sps:$4 sm:$0xff]   ;;  %v5343_v12 = vld [vmem:[#allocation2 + $0x240] ss:$16 sps:$4 sm:$0xff]  }
  0x51   :  { %1502 = vmatpush1.bf16.msra.mxu0 %v5272_v26  ;;  %1674 = vmatpush1.bf16.msra.mxu1 %v5273_v27  ;;  %v5346_v13 = vld [vmem:[#allocation2 + $0x248] ss:$16 sps:$4 sm:$0xff]   ;;  %v5351_v14 = vld [vmem:[#allocation2 + $0x264] ss:$16 sps:$4 sm:$0xff]   ;;  %v5354_v15 = vld [vmem:[#allocation2 + $0x26c] ss:$16 sps:$4 sm:$0xff]  }
  0x52   :  { %1503 = vmatprep.subr.bf16.mxu0 %v5274_v28  ;;  %1675 = vmatprep.subr.bf16.mxu1 %v5276_v29  ;;  %v5349_v16 = vld [vmem:[#allocation2 + $0x260] ss:$16 sps:$4 sm:$0xff]   ;;  %v5352_v17 = vld [vmem:[#allocation2 + $0x268] ss:$16 sps:$4 sm:$0xff]   ;;  %v5357_v18 = vld [vmem:[#allocation2 + $0x284] ss:$16 sps:$4 sm:$0xff]  }
  0x53   :  { %v5360_v19 = vld [vmem:[#allocation2 + $0x28c] ss:$16 sps:$4 sm:$0xff]   ;;  %v5355_v20 = vld [vmem:[#allocation2 + $0x280] ss:$16 sps:$4 sm:$0xff]   ;;  %v5358_v21 = vld [vmem:[#allocation2 + $0x288] ss:$16 sps:$4 sm:$0xff]  }
  0x54   :  { %v5363_v22 = vld [vmem:[#allocation2 + $0x2a4] ss:$16 sps:$4 sm:$0xff]   ;;  %v5366_v23 = vld [vmem:[#allocation2 + $0x2ac] ss:$16 sps:$4 sm:$0xff]   ;;  %v5361_v24 = vld [vmem:[#allocation2 + $0x2a0] ss:$16 sps:$4 sm:$0xff]  }
  0x55   :  { %1504 = vmatpush1.bf16.msra.mxu0 %v5278_v30  ;;  %1676 = vmatpush1.bf16.msra.mxu1 %v5279_v31  ;;  %v5364_v25 = vld [vmem:[#allocation2 + $0x2a8] ss:$16 sps:$4 sm:$0xff]   ;;  %v5369_v26 = vld [vmem:[#allocation2 + $0x2c4] ss:$16 sps:$4 sm:$0xff]   ;;  %v5372_v27 = vld [vmem:[#allocation2 + $0x2cc] ss:$16 sps:$4 sm:$0xff]  }
  0x56   :  { %1505 = vmatprep.subr.bf16.mxu0 %v5280_v32  ;;  %1677 = vmatprep.subr.bf16.mxu1 %v5282_v33  ;;  %v5367_v28 = vld [vmem:[#allocation2 + $0x2c0] ss:$16 sps:$4 sm:$0xff]   ;;  %v5370_v29 = vld [vmem:[#allocation2 + $0x2c8] ss:$16 sps:$4 sm:$0xff]   ;;  %v5375_v31 = vld [vmem:[#allocation2 + $0x2e4] ss:$16 sps:$4 sm:$0xff]  }
  0x57   :  { %v5429_v30 = vld [vmem:[%s6544_s0 + $0xc] ss:$28 sps:$4 sm:$0xff]   ;;  %v5373_v33 = vld [vmem:[#allocation2 + $0x2e0] ss:$16 sps:$4 sm:$0xff]  }
  0x58   :  { %v5378_v32 = vld [vmem:[#allocation2 + $0x2ec] ss:$16 sps:$4 sm:$0xff]  }
  0x59   :  { %1506 = vmatpush1.bf16.msra.mxu0 %v5284_v34  ;;  %1678 = vmatpush1.bf16.msra.mxu1 %v5285_v35  ;;  %v5376_v34 = vld [vmem:[#allocation2 + $0x2e8] ss:$16 sps:$4 sm:$0xff]   ;;  %v5381_v35 = vld [vmem:[#allocation2 + $0x304] ss:$16 sps:$4 sm:$0xff]   ;;  %v5402_v48 = vld [vmem:[#allocation2 + $0x36c] ss:$16 sps:$4 sm:$0xff]  }
  0x5a   :  { %1507 = vmatprep.subr.bf16.mxu0 %v5286_v36  ;;  %1679 = vmatprep.subr.bf16.mxu1 %v5288_v37  ;;  %v5384_v36 = vld [vmem:[#allocation2 + $0x30c] ss:$16 sps:$4 sm:$0xff]   ;;  %v5379_v37 = vld [vmem:[#allocation2 + $0x300] ss:$16 sps:$4 sm:$0xff]  }
  0x5d   :  { %1508 = vmatpush1.bf16.msra.mxu0 %v5290_v38  ;;  %1680 = vmatpush1.bf16.msra.mxu1 %v5291_v39  ;;  %v5382_v38 = vld [vmem:[#allocation2 + $0x308] ss:$16 sps:$4 sm:$0xff]   ;;  %v5387_v39 = vld [vmem:[#allocation2 + $0x324] ss:$16 sps:$4 sm:$0xff]  }
  0x5e   :  { %1509 = vmatprep.subr.bf16.mxu0 %v5292_v40  ;;  %1681 = vmatprep.subr.bf16.mxu1 %v5294_v41  ;;  %v5390_v40 = vld [vmem:[#allocation2 + $0x32c] ss:$16 sps:$4 sm:$0xff]   ;;  %v5385_v41 = vld [vmem:[#allocation2 + $0x320] ss:$16 sps:$4 sm:$0xff]  }
  0x61   :  { %1510 = vmatpush1.bf16.msra.mxu0 %v5296_v42  ;;  %1682 = vmatpush1.bf16.msra.mxu1 %v5297_v43  ;;  %v5388_v42 = vld [vmem:[#allocation2 + $0x328] ss:$16 sps:$4 sm:$0xff]   ;;  %v5393_v43 = vld [vmem:[#allocation2 + $0x344] ss:$16 sps:$4 sm:$0xff]  }
  0x62   :  { %1511 = vmatprep.subr.bf16.mxu0 %v5298_v44  ;;  %1683 = vmatprep.subr.bf16.mxu1 %v5300_v45  ;;  %v5396_v44 = vld [vmem:[#allocation2 + $0x34c] ss:$16 sps:$4 sm:$0xff]   ;;  %v5391_v45 = vld [vmem:[#allocation2 + $0x340] ss:$16 sps:$4 sm:$0xff]  }
  0x65   :  { %1512 = vmatpush1.bf16.msra.mxu0 %v5302_v46  ;;  %1684 = vmatpush1.bf16.msra.mxu1 %v5303_v47  ;;  %v5394_v46 = vld [vmem:[#allocation2 + $0x348] ss:$16 sps:$4 sm:$0xff]   ;;  %v5399_v47 = vld [vmem:[#allocation2 + $0x364] ss:$16 sps:$4 sm:$0xff]  }
  0x66   :  { %1513 = vmatprep.subr.bf16.mxu0 %v5304_v49  ;;  %1685 = vmatprep.subr.bf16.mxu1 %v5306_v50  ;;  %v5397_v49 = vld [vmem:[#allocation2 + $0x360] ss:$16 sps:$4 sm:$0xff]   ;;  %v5400_v50 = vld [vmem:[#allocation2 + $0x368] ss:$16 sps:$4 sm:$0xff]  }
  0x69   :  { %1514 = vmatpush1.bf16.msra.mxu0 %v5308_v51  ;;  %1686 = vmatpush1.bf16.msra.mxu1 %v5309_v52  ;;  %v5405_v51 = vld [vmem:[#allocation2 + $0x384] ss:$16 sps:$4 sm:$0xff]   ;;  %v5408_v52 = vld [vmem:[#allocation2 + $0x38c] ss:$16 sps:$4 sm:$0xff]  }
  0x6a   :  { %1515 = vmatprep.subr.bf16.mxu0 %v5310_v53  ;;  %1687 = vmatprep.subr.bf16.mxu1 %v5312_v54  ;;  %v5403_v53 = vld [vmem:[#allocation2 + $0x380] ss:$16 sps:$4 sm:$0xff]   ;;  %v5406_v54 = vld [vmem:[#allocation2 + $0x388] ss:$16 sps:$4 sm:$0xff]  }
  0x6d   :  { %1516 = vmatpush1.bf16.msra.mxu0 %v5314_v55  ;;  %1688 = vmatpush1.bf16.msra.mxu1 %v5315_v56  ;;  %v5411_v55 = vld [vmem:[#allocation2 + $0x3a4] ss:$16 sps:$4 sm:$0xff]   ;;  %v5414_v56 = vld [vmem:[#allocation2 + $0x3ac] ss:$16 sps:$4 sm:$0xff]  }
  0x6e   :  { %1517 = vmatprep.subr.bf16.mxu0 %v5316_v57  ;;  %1689 = vmatprep.subr.bf16.mxu1 %v5318_v58  ;;  %v5409_v57 = vld [vmem:[#allocation2 + $0x3a0] ss:$16 sps:$4 sm:$0xff]   ;;  %v5412_v58 = vld [vmem:[#allocation2 + $0x3a8] ss:$16 sps:$4 sm:$0xff]  }
  0x71   :  { %1518 = vmatpush1.bf16.msra.mxu0 %v5320_v59  ;;  %1690 = vmatpush1.bf16.msra.mxu1 %v5321_v60  ;;  %v5417_v59 = vld [vmem:[#allocation2 + $0x3c4] ss:$16 sps:$4 sm:$0xff]   ;;  %v5420_v60 = vld [vmem:[#allocation2 + $0x3cc] ss:$16 sps:$4 sm:$0xff]  }
  0x72   :  { %1519 = vmatprep.subr.bf16.mxu0 %v5322_v61  ;;  %1691 = vmatprep.subr.bf16.mxu1 %v5324_v62  ;;  %v5415_v61 = vld [vmem:[#allocation2 + $0x3c0] ss:$16 sps:$4 sm:$0xff]   ;;  %v5418_v62 = vld [vmem:[#allocation2 + $0x3c8] ss:$16 sps:$4 sm:$0xff]  }
  0x75   :  { %1520 = vmatpush1.bf16.msra.mxu0 %v5326_v63  ;;  %1692 = vmatpush1.bf16.msra.mxu1 %v5327_v0  ;;  %v5423_v63 = vld [vmem:[#allocation2 + $0x3e4] ss:$16 sps:$4 sm:$0xff]   ;;  %v5426_v0 = vld [vmem:[#allocation2 + $0x3ec] ss:$16 sps:$4 sm:$0xff]  }
  0x76   :  { %1532 = vmatprep.subr.bf16.mxu0 %v5333_v1  ;;  %1704 = vmatprep.subr.bf16.mxu1 %v5336_v2  ;;  %v5421_v1 = vld [vmem:[#allocation2 + $0x3e0] ss:$16 sps:$4 sm:$0xff]   ;;  %v5424_v2 = vld [vmem:[#allocation2 + $0x3e8] ss:$16 sps:$4 sm:$0xff]  }
  0x78   :  { %1522 = vmatmul.mubr.bf16.vlgmr.msra.gmra.mrb[0].mxu0 %v5328_v3  ;;  %1694 = vmatmul.mubr.bf16.vlgmr.msra.gmra.mrb[0].mxu1 %v5328_v3  ;;  %v5432_v3 = vld [vmem:[#allocation2 + $0x404] ss:$16 sps:$4 sm:$0xff]  }
  0x79   :  { %1533 = vmatpush1.bf16.msra.mxu0 %v5331_v4  ;;  %1705 = vmatpush1.bf16.msra.mxu1 %v5334_v5  ;;  %v5435_v4 = vld [vmem:[#allocation2 + $0x40c] ss:$16 sps:$4 sm:$0xff]   ;;  %v5427_v5 = vld [vmem:[%s6544_s0 + $0x8] ss:$28 sps:$4 sm:$0xff]  }
  0x7a   :  { %1534 = vmatprep.subr.bf16.mxu0 %v5339_v6  ;;  %1706 = vmatprep.subr.bf16.mxu1 %v5342_v7  ;;  %v5430_v6 = vld [vmem:[#allocation2 + $0x400] ss:$16 sps:$4 sm:$0xff]   ;;  %v5433_v7 = vld [vmem:[#allocation2 + $0x408] ss:$16 sps:$4 sm:$0xff]  }
  0x7b   :  { %1564 = vmatprep.mubr.bf16.mxu0 %v5429_v30  ;;  %1736 = vmatprep.mubr.bf16.mxu1 %v5429_v30  ;;  %v5471_v30 = vld [vmem:[#allocation2 + $0x4cc] ss:$16 sps:$4 sm:$0xff]  }
  0x7d   :  { %1535 = vmatpush1.bf16.msra.mxu0 %v5337_v8  ;;  %1707 = vmatpush1.bf16.msra.mxu1 %v5340_v9  ;;  %v5438_v8 = vld [vmem:[#allocation2 + $0x424] ss:$16 sps:$4 sm:$0xff]   ;;  %v5441_v9 = vld [vmem:[#allocation2 + $0x42c] ss:$16 sps:$4 sm:$0xff]  }
  0x7e   :  { %1536 = vmatprep.subr.bf16.mxu0 %v5345_v10  ;;  %1708 = vmatprep.subr.bf16.mxu1 %v5348_v11  ;;  %v5436_v10 = vld [vmem:[#allocation2 + $0x420] ss:$16 sps:$4 sm:$0xff]   ;;  %v5439_v11 = vld [vmem:[#allocation2 + $0x428] ss:$16 sps:$4 sm:$0xff]  }
  0x81   :  { %1537 = vmatpush1.bf16.msra.mxu0 %v5343_v12  ;;  %1709 = vmatpush1.bf16.msra.mxu1 %v5346_v13  ;;  %v5528_v12 = vld [vmem:[%s6544_s0 + $0x14] ss:$28 sps:$4 sm:$0xff]  }
  0x82   :  { %1538 = vmatprep.subr.bf16.mxu0 %v5351_v14  ;;  %1710 = vmatprep.subr.bf16.mxu1 %v5354_v15  ;;  %v5444_v13 = vld [vmem:[#allocation2 + $0x444] ss:$16 sps:$4 sm:$0xff]   ;;  %v5447_v14 = vld [vmem:[#allocation2 + $0x44c] ss:$16 sps:$4 sm:$0xff]   ;;  %v5442_v15 = vld [vmem:[#allocation2 + $0x440] ss:$16 sps:$4 sm:$0xff]  }
  0x85   :  { %1539 = vmatpush1.bf16.msra.mxu0 %v5349_v16  ;;  %1711 = vmatpush1.bf16.msra.mxu1 %v5352_v17  ;;  %v5445_v16 = vld [vmem:[#allocation2 + $0x448] ss:$16 sps:$4 sm:$0xff]   ;;  %v5450_v17 = vld [vmem:[#allocation2 + $0x464] ss:$16 sps:$4 sm:$0xff]  }
  0x86   :  { %1540 = vmatprep.subr.bf16.mxu0 %v5357_v18  ;;  %1712 = vmatprep.subr.bf16.mxu1 %v5360_v19  ;;  %v5453_v18 = vld [vmem:[#allocation2 + $0x46c] ss:$16 sps:$4 sm:$0xff]   ;;  %v5448_v19 = vld [vmem:[#allocation2 + $0x460] ss:$16 sps:$4 sm:$0xff]  }
  0x89   :  { %1541 = vmatpush1.bf16.msra.mxu0 %v5355_v20  ;;  %1713 = vmatpush1.bf16.msra.mxu1 %v5358_v21  ;;  %v5451_v20 = vld [vmem:[#allocation2 + $0x468] ss:$16 sps:$4 sm:$0xff]   ;;  %v5456_v21 = vld [vmem:[#allocation2 + $0x484] ss:$16 sps:$4 sm:$0xff]  }
  0x8a   :  { %1542 = vmatprep.subr.bf16.mxu0 %v5363_v22  ;;  %1714 = vmatprep.subr.bf16.mxu1 %v5366_v23  ;;  %v5459_v22 = vld [vmem:[#allocation2 + $0x48c] ss:$16 sps:$4 sm:$0xff]   ;;  %v5454_v23 = vld [vmem:[#allocation2 + $0x480] ss:$16 sps:$4 sm:$0xff]  }
  0x8d   :  { %1543 = vmatpush1.bf16.msra.mxu0 %v5361_v24  ;;  %1715 = vmatpush1.bf16.msra.mxu1 %v5364_v25  ;;  %v5457_v24 = vld [vmem:[#allocation2 + $0x488] ss:$16 sps:$4 sm:$0xff]   ;;  %v5462_v25 = vld [vmem:[#allocation2 + $0x4a4] ss:$16 sps:$4 sm:$0xff]  }
  0x8e   :  { %1544 = vmatprep.subr.bf16.mxu0 %v5369_v26  ;;  %1716 = vmatprep.subr.bf16.mxu1 %v5372_v27  ;;  %v5465_v26 = vld [vmem:[#allocation2 + $0x4ac] ss:$16 sps:$4 sm:$0xff]   ;;  %v5460_v27 = vld [vmem:[#allocation2 + $0x4a0] ss:$16 sps:$4 sm:$0xff]  }
  0x91   :  { %1545 = vmatpush1.bf16.msra.mxu0 %v5367_v28  ;;  %1717 = vmatpush1.bf16.msra.mxu1 %v5370_v29  ;;  %v5463_v28 = vld [vmem:[#allocation2 + $0x4a8] ss:$16 sps:$4 sm:$0xff]   ;;  %v5468_v29 = vld [vmem:[#allocation2 + $0x4c4] ss:$16 sps:$4 sm:$0xff]  }
  0x92   :  { %1546 = vmatprep.subr.bf16.mxu0 %v5375_v31  ;;  %1718 = vmatprep.subr.bf16.mxu1 %v5378_v32  ;;  %v5466_v31 = vld [vmem:[#allocation2 + $0x4c0] ss:$16 sps:$4 sm:$0xff]   ;;  %v5469_v32 = vld [vmem:[#allocation2 + $0x4c8] ss:$16 sps:$4 sm:$0xff]  }
  0x95   :  { %1547 = vmatpush1.bf16.msra.mxu0 %v5373_v33  ;;  %1719 = vmatpush1.bf16.msra.mxu1 %v5376_v34  ;;  %v5474_v33 = vld [vmem:[#allocation2 + $0x4e4] ss:$16 sps:$4 sm:$0xff]   ;;  %v5477_v34 = vld [vmem:[#allocation2 + $0x4ec] ss:$16 sps:$4 sm:$0xff]  }
  0x96   :  { %1548 = vmatprep.subr.bf16.mxu0 %v5381_v35  ;;  %1720 = vmatprep.subr.bf16.mxu1 %v5384_v36  ;;  %v5472_v35 = vld [vmem:[#allocation2 + $0x4e0] ss:$16 sps:$4 sm:$0xff]   ;;  %v5475_v36 = vld [vmem:[#allocation2 + $0x4e8] ss:$16 sps:$4 sm:$0xff]  }
  0x99   :  { %1549 = vmatpush1.bf16.msra.mxu0 %v5379_v37  ;;  %1721 = vmatpush1.bf16.msra.mxu1 %v5382_v38  ;;  %v5480_v37 = vld [vmem:[#allocation2 + $0x504] ss:$16 sps:$4 sm:$0xff]   ;;  %v5483_v38 = vld [vmem:[#allocation2 + $0x50c] ss:$16 sps:$4 sm:$0xff]  }
  0x9a   :  { %1550 = vmatprep.subr.bf16.mxu0 %v5387_v39  ;;  %1722 = vmatprep.subr.bf16.mxu1 %v5390_v40  ;;  %v5478_v39 = vld [vmem:[#allocation2 + $0x500] ss:$16 sps:$4 sm:$0xff]   ;;  %v5481_v40 = vld [vmem:[#allocation2 + $0x508] ss:$16 sps:$4 sm:$0xff]  }
  0x9d   :  { %1551 = vmatpush1.bf16.msra.mxu0 %v5385_v41  ;;  %1723 = vmatpush1.bf16.msra.mxu1 %v5388_v42  ;;  %v5486_v41 = vld [vmem:[#allocation2 + $0x524] ss:$16 sps:$4 sm:$0xff]   ;;  %v5489_v42 = vld [vmem:[#allocation2 + $0x52c] ss:$16 sps:$4 sm:$0xff]  }
  0x9e   :  { %1552 = vmatprep.subr.bf16.mxu0 %v5393_v43  ;;  %1724 = vmatprep.subr.bf16.mxu1 %v5396_v44  ;;  %v5484_v43 = vld [vmem:[#allocation2 + $0x520] ss:$16 sps:$4 sm:$0xff]   ;;  %v5487_v44 = vld [vmem:[#allocation2 + $0x528] ss:$16 sps:$4 sm:$0xff]  }
  0xa1   :  { %1553 = vmatpush1.bf16.msra.mxu0 %v5391_v45  ;;  %1725 = vmatpush1.bf16.msra.mxu1 %v5394_v46  ;;  %v5492_v45 = vld [vmem:[#allocation2 + $0x544] ss:$16 sps:$4 sm:$0xff]   ;;  %v5495_v46 = vld [vmem:[#allocation2 + $0x54c] ss:$16 sps:$4 sm:$0xff]  }
  0xa2   :  { %1554 = vmatprep.subr.bf16.mxu0 %v5399_v47  ;;  %1726 = vmatprep.subr.bf16.mxu1 %v5402_v48  ;;  %v5490_v47 = vld [vmem:[#allocation2 + $0x540] ss:$16 sps:$4 sm:$0xff]   ;;  %v5493_v48 = vld [vmem:[#allocation2 + $0x548] ss:$16 sps:$4 sm:$0xff]  }
  0xa5   :  { %1555 = vmatpush1.bf16.msra.mxu0 %v5397_v49  ;;  %1727 = vmatpush1.bf16.msra.mxu1 %v5400_v50  ;;  %v5498_v49 = vld [vmem:[#allocation2 + $0x564] ss:$16 sps:$4 sm:$0xff]   ;;  %v5501_v50 = vld [vmem:[#allocation2 + $0x56c] ss:$16 sps:$4 sm:$0xff]  }
  0xa6   :  { %1556 = vmatprep.subr.bf16.mxu0 %v5405_v51  ;;  %1728 = vmatprep.subr.bf16.mxu1 %v5408_v52  ;;  %v5496_v51 = vld [vmem:[#allocation2 + $0x560] ss:$16 sps:$4 sm:$0xff]   ;;  %v5499_v52 = vld [vmem:[#allocation2 + $0x568] ss:$16 sps:$4 sm:$0xff]  }
  0xa9   :  { %1557 = vmatpush1.bf16.msra.mxu0 %v5403_v53  ;;  %1729 = vmatpush1.bf16.msra.mxu1 %v5406_v54  ;;  %v5504_v53 = vld [vmem:[#allocation2 + $0x584] ss:$16 sps:$4 sm:$0xff]   ;;  %v5507_v54 = vld [vmem:[#allocation2 + $0x58c] ss:$16 sps:$4 sm:$0xff]  }
  0xaa   :  { %1558 = vmatprep.subr.bf16.mxu0 %v5411_v55  ;;  %1730 = vmatprep.subr.bf16.mxu1 %v5414_v56  ;;  %v5502_v55 = vld [vmem:[#allocation2 + $0x580] ss:$16 sps:$4 sm:$0xff]   ;;  %v5505_v56 = vld [vmem:[#allocation2 + $0x588] ss:$16 sps:$4 sm:$0xff]  }
  0xad   :  { %1559 = vmatpush1.bf16.msra.mxu0 %v5409_v57  ;;  %1731 = vmatpush1.bf16.msra.mxu1 %v5412_v58  ;;  %v5510_v57 = vld [vmem:[#allocation2 + $0x5a4] ss:$16 sps:$4 sm:$0xff]   ;;  %v5513_v58 = vld [vmem:[#allocation2 + $0x5ac] ss:$16 sps:$4 sm:$0xff]  }
  0xae   :  { %1560 = vmatprep.subr.bf16.mxu0 %v5417_v59  ;;  %1732 = vmatprep.subr.bf16.mxu1 %v5420_v60  ;;  %v5508_v59 = vld [vmem:[#allocation2 + $0x5a0] ss:$16 sps:$4 sm:$0xff]   ;;  %v5511_v60 = vld [vmem:[#allocation2 + $0x5a8] ss:$16 sps:$4 sm:$0xff]  }
  0xb1   :  { %1561 = vmatpush1.bf16.msra.mxu0 %v5415_v61  ;;  %1733 = vmatpush1.bf16.msra.mxu1 %v5418_v62  ;;  %v5516_v61 = vld [vmem:[#allocation2 + $0x5c4] ss:$16 sps:$4 sm:$0xff]   ;;  %v5519_v62 = vld [vmem:[#allocation2 + $0x5cc] ss:$16 sps:$4 sm:$0xff]  }
  0xb2   :  { %1562 = vmatprep.subr.bf16.mxu0 %v5423_v63  ;;  %1734 = vmatprep.subr.bf16.mxu1 %v5426_v0  ;;  %v5514_v63 = vld [vmem:[#allocation2 + $0x5c0] ss:$16 sps:$4 sm:$0xff]   ;;  %v5517_v0 = vld [vmem:[#allocation2 + $0x5c8] ss:$16 sps:$4 sm:$0xff]  }
  0xb5   :  { %1563 = vmatpush1.bf16.msra.mxu0 %v5421_v1  ;;  %1735 = vmatpush1.bf16.msra.mxu1 %v5424_v2  ;;  %v5522_v1 = vld [vmem:[#allocation2 + $0x5e4] ss:$16 sps:$4 sm:$0xff]   ;;  %v5525_v2 = vld [vmem:[#allocation2 + $0x5ec] ss:$16 sps:$4 sm:$0xff]  }
  0xb6   :  { %1575 = vmatprep.subr.bf16.mxu0 %v5432_v3  ;;  %1747 = vmatprep.subr.bf16.mxu1 %v5435_v4  ;;  %v5520_v3 = vld [vmem:[#allocation2 + $0x5e0] ss:$16 sps:$4 sm:$0xff]   ;;  %v5523_v4 = vld [vmem:[#allocation2 + $0x5e8] ss:$16 sps:$4 sm:$0xff]  }
  0xb8   :  { %1565 = vmatmul.mubr.bf16.vlgmr.msra.gmra.mrb[0].mxu0 %v5427_v5  ;;  %1737 = vmatmul.mubr.bf16.vlgmr.msra.gmra.mrb[0].mxu1 %v5427_v5  ;;  %v5531_v5 = vld [vmem:[#allocation2 + $0x604] ss:$16 sps:$4 sm:$0xff]  }
  0xb9   :  { %1576 = vmatpush1.bf16.msra.mxu0 %v5430_v6  ;;  %1748 = vmatpush1.bf16.msra.mxu1 %v5433_v7  ;;  %v5534_v6 = vld [vmem:[#allocation2 + $0x60c] ss:$16 sps:$4 sm:$0xff]  }
  0xba   :  { %1577 = vmatprep.subr.bf16.mxu0 %v5438_v8  ;;  %1749 = vmatprep.subr.bf16.mxu1 %v5441_v9  ;;  %v5526_v7 = vld [vmem:[%s6544_s0 + $0x10] ss:$28 sps:$4 sm:$0xff]   ;;  %v5532_v9 = vld [vmem:[#allocation2 + $0x608] ss:$16 sps:$4 sm:$0xff]  }
  0xbb   :  { %1607 = vmatprep.mubr.bf16.mxu0 %v5528_v12  ;;  %1779 = vmatprep.mubr.bf16.mxu1 %v5528_v12  ;;  %v5529_v8 = vld [vmem:[#allocation2 + $0x600] ss:$16 sps:$4 sm:$0xff]  }
  0xbc   :  { %v5535_v12 = vld [vmem:[#allocation2 + $0x620] ss:$16 sps:$4 sm:$0xff]  }
  0xbd   :  { %1578 = vmatpush1.bf16.msra.mxu0 %v5436_v10  ;;  %1750 = vmatpush1.bf16.msra.mxu1 %v5439_v11  ;;  %v5537_v10 = vld [vmem:[#allocation2 + $0x624] ss:$16 sps:$4 sm:$0xff]   ;;  %v5540_v11 = vld [vmem:[#allocation2 + $0x62c] ss:$16 sps:$4 sm:$0xff]  }
  0xbe   :  { %1579 = vmatprep.subr.bf16.mxu0 %v5444_v13  ;;  %1751 = vmatprep.subr.bf16.mxu1 %v5447_v14  ;;  %v5538_v13 = vld [vmem:[#allocation2 + $0x628] ss:$16 sps:$4 sm:$0xff]   ;;  %v5543_v14 = vld [vmem:[#allocation2 + $0x644] ss:$16 sps:$4 sm:$0xff]  }
  0xc1   :  { %1580 = vmatpush1.bf16.msra.mxu0 %v5442_v15  ;;  %1752 = vmatpush1.bf16.msra.mxu1 %v5445_v16  ;;  %v5546_v15 = vld [vmem:[#allocation2 + $0x64c] ss:$16 sps:$4 sm:$0xff]   ;;  %v5541_v16 = vld [vmem:[#allocation2 + $0x640] ss:$16 sps:$4 sm:$0xff]  }
  0xc2   :  { %1581 = vmatprep.subr.bf16.mxu0 %v5450_v17  ;;  %1753 = vmatprep.subr.bf16.mxu1 %v5453_v18  ;;  %v5544_v17 = vld [vmem:[#allocation2 + $0x648] ss:$16 sps:$4 sm:$0xff]   ;;  %v6181_v18 = vmov 0  }
  0xc5   :  { %1582 = vmatpush1.bf16.msra.mxu0 %v5448_v19  ;;  %1754 = vmatpush1.bf16.msra.mxu1 %v5451_v20  ;;  %v5549_v19 = vld [vmem:[#allocation2 + $0x664] ss:$16 sps:$4 sm:$0xff]   ;;  %v5552_v20 = vld [vmem:[#allocation2 + $0x66c] ss:$16 sps:$4 sm:$0xff]  }
  0xc6   :  { %1583 = vmatprep.subr.bf16.mxu0 %v5456_v21  ;;  %1755 = vmatprep.subr.bf16.mxu1 %v5459_v22  ;;  %v5547_v21 = vld [vmem:[#allocation2 + $0x660] ss:$16 sps:$4 sm:$0xff]   ;;  %v5550_v22 = vld [vmem:[#allocation2 + $0x668] ss:$16 sps:$4 sm:$0xff]  }
  0xc9   :  { %1584 = vmatpush1.bf16.msra.mxu0 %v5454_v23  ;;  %1756 = vmatpush1.bf16.msra.mxu1 %v5457_v24  ;;  %v5555_v23 = vld [vmem:[#allocation2 + $0x684] ss:$16 sps:$4 sm:$0xff]   ;;  %v5558_v24 = vld [vmem:[#allocation2 + $0x68c] ss:$16 sps:$4 sm:$0xff]  }
  0xca   :  { %1585 = vmatprep.subr.bf16.mxu0 %v5462_v25  ;;  %1757 = vmatprep.subr.bf16.mxu1 %v5465_v26  ;;  %v5553_v25 = vld [vmem:[#allocation2 + $0x680] ss:$16 sps:$4 sm:$0xff]   ;;  %v5556_v26 = vld [vmem:[#allocation2 + $0x688] ss:$16 sps:$4 sm:$0xff]  }
  0xcd   :  { %1586 = vmatpush1.bf16.msra.mxu0 %v5460_v27  ;;  %1758 = vmatpush1.bf16.msra.mxu1 %v5463_v28  ;;  %v5561_v27 = vld [vmem:[#allocation2 + $0x6a4] ss:$16 sps:$4 sm:$0xff]   ;;  %v5564_v28 = vld [vmem:[#allocation2 + $0x6ac] ss:$16 sps:$4 sm:$0xff]  }
  0xce   :  { %1587 = vmatprep.subr.bf16.mxu0 %v5468_v29  ;;  %1759 = vmatprep.subr.bf16.mxu1 %v5471_v30  ;;  %v5559_v29 = vld [vmem:[#allocation2 + $0x6a0] ss:$16 sps:$4 sm:$0xff]   ;;  %v5562_v30 = vld [vmem:[#allocation2 + $0x6a8] ss:$16 sps:$4 sm:$0xff]  }
  0xd1   :  { %1588 = vmatpush1.bf16.msra.mxu0 %v5466_v31  ;;  %1760 = vmatpush1.bf16.msra.mxu1 %v5469_v32  ;;  %v5567_v31 = vld [vmem:[#allocation2 + $0x6c4] ss:$16 sps:$4 sm:$0xff]   ;;  %v5570_v32 = vld [vmem:[#allocation2 + $0x6cc] ss:$16 sps:$4 sm:$0xff]  }
  0xd2   :  { %1589 = vmatprep.subr.bf16.mxu0 %v5474_v33  ;;  %1761 = vmatprep.subr.bf16.mxu1 %v5477_v34  ;;  %v5565_v33 = vld [vmem:[#allocation2 + $0x6c0] ss:$16 sps:$4 sm:$0xff]   ;;  %v5568_v34 = vld [vmem:[#allocation2 + $0x6c8] ss:$16 sps:$4 sm:$0xff]  }
  0xd5   :  { %1590 = vmatpush1.bf16.msra.mxu0 %v5472_v35  ;;  %1762 = vmatpush1.bf16.msra.mxu1 %v5475_v36  ;;  %v5573_v35 = vld [vmem:[#allocation2 + $0x6e4] ss:$16 sps:$4 sm:$0xff]   ;;  %v5576_v36 = vld [vmem:[#allocation2 + $0x6ec] ss:$16 sps:$4 sm:$0xff]  }
  0xd6   :  { %1591 = vmatprep.subr.bf16.mxu0 %v5480_v37  ;;  %1763 = vmatprep.subr.bf16.mxu1 %v5483_v38  ;;  %v5571_v37 = vld [vmem:[#allocation2 + $0x6e0] ss:$16 sps:$4 sm:$0xff]   ;;  %v5574_v38 = vld [vmem:[#allocation2 + $0x6e8] ss:$16 sps:$4 sm:$0xff]  }
  0xd9   :  { %1592 = vmatpush1.bf16.msra.mxu0 %v5478_v39  ;;  %1764 = vmatpush1.bf16.msra.mxu1 %v5481_v40  ;;  %v5580_v39 = vld [vmem:[#allocation4 + $0x4] ss:$8 sps:$4 sm:$0xff]   ;;  %v5577_v40 = vld [vmem:[%s6544_s0 + $0x18] ss:$28 sps:$4 sm:$0xff]  }
  0xda   :  { %1593 = vmatprep.subr.bf16.mxu0 %v5486_v41  ;;  %1765 = vmatprep.subr.bf16.mxu1 %v5489_v42  ;;  %v5578_v41 = vld [vmem:[#allocation4] ss:$8 sps:$4 sm:$0xff]   ;;  %v5583_v42 = vld [vmem:[#allocation4 + $0x14] ss:$8 sps:$4 sm:$0xff]  }
  0xdd   :  { %1594 = vmatpush1.bf16.msra.mxu0 %v5484_v43  ;;  %1766 = vmatpush1.bf16.msra.mxu1 %v5487_v44  ;;  %v5581_v43 = vld [vmem:[#allocation4 + $0x10] ss:$8 sps:$4 sm:$0xff]   ;;  %v5586_v44 = vld [vmem:[#allocation4 + $0x24] ss:$8 sps:$4 sm:$0xff]  }
  0xde   :  { %1595 = vmatprep.subr.bf16.mxu0 %v5492_v45  ;;  %1767 = vmatprep.subr.bf16.mxu1 %v5495_v46  ;;  %v5584_v45 = vld [vmem:[#allocation4 + $0x20] ss:$8 sps:$4 sm:$0xff]   ;;  %v5589_v46 = vld [vmem:[#allocation4 + $0x34] ss:$8 sps:$4 sm:$0xff]  }
  0xe1   :  { %1596 = vmatpush1.bf16.msra.mxu0 %v5490_v47  ;;  %1768 = vmatpush1.bf16.msra.mxu1 %v5493_v48  ;;  %v5587_v47 = vld [vmem:[#allocation4 + $0x30] ss:$8 sps:$4 sm:$0xff]   ;;  %v5592_v48 = vld [vmem:[#allocation4 + $0x44] ss:$8 sps:$4 sm:$0xff]  }
  0xe2   :  { %1597 = vmatprep.subr.bf16.mxu0 %v5498_v49  ;;  %1769 = vmatprep.subr.bf16.mxu1 %v5501_v50  ;;  %v5590_v49 = vld [vmem:[#allocation4 + $0x40] ss:$8 sps:$4 sm:$0xff]   ;;  %v5595_v50 = vld [vmem:[#allocation4 + $0x54] ss:$8 sps:$4 sm:$0xff]  }
  0xe5   :  { %1598 = vmatpush1.bf16.msra.mxu0 %v5496_v51  ;;  %1770 = vmatpush1.bf16.msra.mxu1 %v5499_v52  ;;  %v5593_v51 = vld [vmem:[#allocation4 + $0x50] ss:$8 sps:$4 sm:$0xff]   ;;  %v5598_v52 = vld [vmem:[#allocation4 + $0x64] ss:$8 sps:$4 sm:$0xff]  }
  0xe6   :  { %1599 = vmatprep.subr.bf16.mxu0 %v5504_v53  ;;  %1771 = vmatprep.subr.bf16.mxu1 %v5507_v54  ;;  %v5596_v53 = vld [vmem:[#allocation4 + $0x60] ss:$8 sps:$4 sm:$0xff]   ;;  %v5601_v54 = vld [vmem:[#allocation4 + $0x74] ss:$8 sps:$4 sm:$0xff]  }
  0xe9   :  { %1600 = vmatpush1.bf16.msra.mxu0 %v5502_v55  ;;  %1772 = vmatpush1.bf16.msra.mxu1 %v5505_v56  ;;  %v5599_v55 = vld [vmem:[#allocation4 + $0x70] ss:$8 sps:$4 sm:$0xff]   ;;  %v5604_v56 = vld [vmem:[#allocation4 + $0x84] ss:$8 sps:$4 sm:$0xff]  }
  0xea   :  { %1601 = vmatprep.subr.bf16.mxu0 %v5510_v57  ;;  %1773 = vmatprep.subr.bf16.mxu1 %v5513_v58  ;;  %v5602_v57 = vld [vmem:[#allocation4 + $0x80] ss:$8 sps:$4 sm:$0xff]   ;;  %v5607_v58 = vld [vmem:[#allocation4 + $0x94] ss:$8 sps:$4 sm:$0xff]  }
  0xed   :  { %1602 = vmatpush1.bf16.msra.mxu0 %v5508_v59  ;;  %1774 = vmatpush1.bf16.msra.mxu1 %v5511_v60  ;;  %v5605_v59 = vld [vmem:[#allocation4 + $0x90] ss:$8 sps:$4 sm:$0xff]   ;;  %v5610_v60 = vld [vmem:[#allocation4 + $0xa4] ss:$8 sps:$4 sm:$0xff]  }
  0xee   :  { %1603 = vmatprep.subr.bf16.mxu0 %v5516_v61  ;;  %1775 = vmatprep.subr.bf16.mxu1 %v5519_v62  ;;  %v5608_v61 = vld [vmem:[#allocation4 + $0xa0] ss:$8 sps:$4 sm:$0xff]   ;;  %v5613_v62 = vld [vmem:[#allocation4 + $0xb4] ss:$8 sps:$4 sm:$0xff]  }
  0xf1   :  { %1604 = vmatpush1.bf16.msra.mxu0 %v5514_v63  ;;  %1776 = vmatpush1.bf16.msra.mxu1 %v5517_v0  ;;  %v5611_v63 = vld [vmem:[#allocation4 + $0xb0] ss:$8 sps:$4 sm:$0xff]   ;;  %v5616_v0 = vld [vmem:[#allocation4 + $0xc4] ss:$8 sps:$4 sm:$0xff]  }
  0xf2   :  { %1605 = vmatprep.subr.bf16.mxu0 %v5522_v1  ;;  %1777 = vmatprep.subr.bf16.mxu1 %v5525_v2  ;;  %v5614_v1 = vld [vmem:[#allocation4 + $0xc0] ss:$8 sps:$4 sm:$0xff]   ;;  %v5619_v2 = vld [vmem:[#allocation4 + $0xd4] ss:$8 sps:$4 sm:$0xff]  }
  0xf5   :  { %1606 = vmatpush1.bf16.msra.mxu0 %v5520_v3  ;;  %1778 = vmatpush1.bf16.msra.mxu1 %v5523_v4  ;;  %v5617_v3 = vld [vmem:[#allocation4 + $0xd0] ss:$8 sps:$4 sm:$0xff]   ;;  %v5622_v4 = vld [vmem:[#allocation4 + $0xe4] ss:$8 sps:$4 sm:$0xff]  }
  0xf6   :  { %1618 = vmatprep.subr.bf16.mxu0 %v5531_v5  ;;  %1790 = vmatprep.subr.bf16.mxu1 %v5534_v6  ;;  %v5620_v5 = vld [vmem:[#allocation4 + $0xe0] ss:$8 sps:$4 sm:$0xff]   ;;  %v5625_v6 = vld [vmem:[#allocation4 + $0xf4] ss:$8 sps:$4 sm:$0xff]  }
  0xf8   :  { %1608 = vmatmul.mubr.bf16.vlgmr.msra.gmra.mrb[0].mxu0 %v5526_v7  ;;  %1780 = vmatmul.mubr.bf16.vlgmr.msra.gmra.mrb[0].mxu1 %v5526_v7  ;;  %v5623_v7 = vld [vmem:[#allocation4 + $0xf0] ss:$8 sps:$4 sm:$0xff]  }
  0xf9   :  { %1619 = vmatpush1.bf16.msra.mxu0 %v5529_v8  ;;  %1791 = vmatpush1.bf16.msra.mxu1 %v5532_v9  ;;  %v5628_v8 = vld [vmem:[#allocation4 + $0x104] ss:$8 sps:$4 sm:$0xff]   ;;  %v5674_v9 = vld [vmem:[%s6550_s6] ss:$16 sps:$4 sm:$0xff]  }
  0xfa   :  { %1620 = vmatprep.subr.bf16.mxu0 %v5537_v10  ;;  %1792 = vmatprep.subr.bf16.mxu1 %v5540_v11  ;;  %v5676_v10 = vld [vmem:[%s6550_s6 + $0x4] ss:$16 sps:$4 sm:$0xff]  }
  0xfb   :  { %1650 = vmatprep.mubr.bf16.mxu0 %v6181_v18  ;;  %1822 = vmatprep.mubr.bf16.mxu1 %v6181_v18  ;;  %v5679_v11 = vld [vmem:[%s6550_s6 + $0x24] ss:$16 sps:$4 sm:$0xff]  }
  0xfd   :  { %1621 = vmatpush1.bf16.msra.mxu0 %v5535_v12  ;;  %1793 = vmatpush1.bf16.msra.mxu1 %v5538_v13  ;;  %v5677_v12 = vld [vmem:[%s6550_s6 + $0x20] ss:$16 sps:$4 sm:$0xff]   ;;  %v313_v13 = vlaneseq }
  0xfe   :  { %1622 = vmatprep.subr.bf16.mxu0 %v5543_v14  ;;  %1794 = vmatprep.subr.bf16.mxu1 %v5546_v15 }
  0xff   :  { %v6314_v14 = vshrl.u32 %v313_v13, 7  ;;  %v5662_v13 = vld [vmem:[#allocation4 + $0x1c0] ss:$8 sps:$4 sm:$0xff]  }
 0x101   :  { %1623 = vmatpush1.bf16.msra.mxu0 %v5541_v16  ;;  %1795 = vmatpush1.bf16.msra.mxu1 %v5544_v17  ;;  %v6317_v15 = vsub.s32 0, %v6314_v14  ;;  %v6320_v16 = vsub.s32 2, %v6314_v14  ;;  %v311_v17 = vld [vmem:[%s6547_s3] sm:$0xf] }
 0x102   :  { %1624 = vmatprep.subr.bf16.mxu0 %v5549_v19  ;;  %1796 = vmatprep.subr.bf16.mxu1 %v5552_v20  ;;  %v6326_v19 = vsub.s32 1, %v6314_v14  ;;  %v6329_v20 = vsub.s32 3, %v6314_v14 }
 0x105   :  { %1625 = vmatpush1.bf16.msra.mxu0 %v5547_v21  ;;  %1797 = vmatpush1.bf16.msra.mxu1 %v5550_v22  ;;  %v316_v21 = vrot.slane %v311_v17, %v6317_v15  ;;  %v324_v22 = vrot.slane %v311_v17, %v6320_v16 }
 0x106   :  { %1626 = vmatprep.subr.bf16.mxu0 %v5555_v23  ;;  %1798 = vmatprep.subr.bf16.mxu1 %v5558_v24  ;;  %v320_v23 = vrot.slane %v311_v17, %v6326_v19  ;;  %v328_v24 = vrot.slane %v311_v17, %v6329_v20  ;;  %v5667_v17 = vld [vmem:[#allocation4 + $0x1d4] ss:$8 sps:$4 sm:$0xff]  }
 0x109   :  { %1627 = vmatpush1.bf16.msra.mxu0 %v5553_v25  ;;  %1799 = vmatpush1.bf16.msra.mxu1 %v5556_v26 }
 0x10a   :  { %1628 = vmatprep.subr.bf16.mxu0 %v5561_v27  ;;  %1800 = vmatprep.subr.bf16.mxu1 %v5564_v28 }
 0x10d   :  { %1629 = vmatpush1.bf16.msra.mxu0 %v5559_v29  ;;  %1801 = vmatpush1.bf16.msra.mxu1 %v5562_v30 }
 0x10e   :  { %1630 = vmatprep.subr.bf16.mxu0 %v5567_v31  ;;  %1802 = vmatprep.subr.bf16.mxu1 %v5570_v32 }
 0x111   :  { %1631 = vmatpush1.bf16.msra.mxu0 %v5565_v33  ;;  %1803 = vmatpush1.bf16.msra.mxu1 %v5568_v34 }
 0x112   :  { %1632 = vmatprep.subr.bf16.mxu0 %v5573_v35  ;;  %1804 = vmatprep.subr.bf16.mxu1 %v5576_v36 }
 0x115   :  { %1633 = vmatpush1.bf16.msra.mxu0 %v5571_v37  ;;  %1805 = vmatpush1.bf16.msra.mxu1 %v5574_v38 }
 0x116   :  { %2241 = vmatprep.subr.bf16.mxu0 %v5580_v39  ;;  %2558 = vmatprep.subr.bf16.mxu1 %v5676_v10  ;;  %v5661_v10 = vld [vmem:[#allocation4 + $0x1b4] ss:$8 sps:$4 sm:$0xff]  }
 0x118   :  { %1651 = vmatmul.mubr.bf16.vlgmr.msra.gmra.mrb[0].mxu0 %v5577_v40  ;;  %1823 = vmatmul.mubr.bf16.vlgmr.msra.gmra.mrb[0].mxu1 %v5577_v40 }
 0x119   :  { %2242 = vmatpush1.bf16.msra.mxu0 %v5578_v41  ;;  %2590 = vmatprep.mubr.bf16.mxu1 %v6181_v18 }
 0x11a   :  { %2243 = vmatprep.subr.bf16.mxu0 %v5583_v42  ;;  %2559 = vmatpush1.bf16.msra.mxu1 %v5674_v9  ;;  %v5656_v9 = vld [vmem:[#allocation4 + $0x1a0] ss:$8 sps:$4 sm:$0xff]  }
 0x11b   :  { %2560 = vmatprep.subr.bf16.mxu1 %v5679_v11  ;;  %v5659_v11 = vld [vmem:[#allocation4 + $0x1b0] ss:$8 sps:$4 sm:$0xff]  }
 0x11d   :  { %2244 = vmatpush1.bf16.msra.mxu0 %v5581_v43 }
 0x11e   :  { %2245 = vmatprep.subr.bf16.mxu0 %v5586_v44  ;;  %2561 = vmatpush1.bf16.msra.mxu1 %v5677_v12  ;;  %v5664_v12 = vld [vmem:[#allocation4 + $0x1c4] ss:$8 sps:$4 sm:$0xff]  }
 0x121   :  { %2246 = vmatpush1.bf16.msra.mxu0 %v5584_v45 }
 0x122   :  { %2247 = vmatprep.subr.bf16.mxu0 %v5589_v46 }
 0x125   :  { %2248 = vmatpush1.bf16.msra.mxu0 %v5587_v47 }
 0x126   :  { %2249 = vmatprep.subr.bf16.mxu0 %v5592_v48 }
 0x129   :  { %2250 = vmatpush1.bf16.msra.mxu0 %v5590_v49 }
 0x12a   :  { %2251 = vmatprep.subr.bf16.mxu0 %v5595_v50 }
 0x12d   :  { %2252 = vmatpush1.bf16.msra.mxu0 %v5593_v51 }
 0x12e   :  { %2253 = vmatprep.subr.bf16.mxu0 %v5598_v52 }
 0x131   :  { %2254 = vmatpush1.bf16.msra.mxu0 %v5596_v53  ;;  %v5626_v53 = vld [vmem:[#allocation4 + $0x100] ss:$8 sps:$4 sm:$0xff]  }
 0x132   :  { %2255 = vmatprep.subr.bf16.mxu0 %v5601_v54  ;;  %v5631_v54 = vld [vmem:[#allocation4 + $0x114] ss:$8 sps:$4 sm:$0xff]  }
 0x135   :  { %2256 = vmatpush1.bf16.msra.mxu0 %v5599_v55  ;;  %v5629_v55 = vld [vmem:[#allocation4 + $0x110] ss:$8 sps:$4 sm:$0xff]  }
 0x136   :  { %2257 = vmatprep.subr.bf16.mxu0 %v5604_v56  ;;  %v5634_v56 = vld [vmem:[#allocation4 + $0x124] ss:$8 sps:$4 sm:$0xff]  }
 0x139   :  { %2258 = vmatpush1.bf16.msra.mxu0 %v5602_v57  ;;  %v5632_v57 = vld [vmem:[#allocation4 + $0x120] ss:$8 sps:$4 sm:$0xff]  }
 0x13a   :  { %2259 = vmatprep.subr.bf16.mxu0 %v5607_v58  ;;  %v5637_v58 = vld [vmem:[#allocation4 + $0x134] ss:$8 sps:$4 sm:$0xff]  }
 0x13d   :  { %2260 = vmatpush1.bf16.msra.mxu0 %v5605_v59  ;;  %v5635_v59 = vld [vmem:[#allocation4 + $0x130] ss:$8 sps:$4 sm:$0xff]  }
 0x13e   :  { %2261 = vmatprep.subr.bf16.mxu0 %v5610_v60  ;;  %v5640_v60 = vld [vmem:[#allocation4 + $0x144] ss:$8 sps:$4 sm:$0xff]  }
 0x141   :  { %2262 = vmatpush1.bf16.msra.mxu0 %v5608_v61  ;;  %v5638_v61 = vld [vmem:[#allocation4 + $0x140] ss:$8 sps:$4 sm:$0xff]  }
 0x142   :  { %2263 = vmatprep.subr.bf16.mxu0 %v5613_v62  ;;  %v5643_v62 = vld [vmem:[#allocation4 + $0x154] ss:$8 sps:$4 sm:$0xff]  }
 0x145   :  { %2264 = vmatpush1.bf16.msra.mxu0 %v5611_v63  ;;  %v5641_v63 = vld [vmem:[#allocation4 + $0x150] ss:$8 sps:$4 sm:$0xff]  }
 0x146   :  { %2265 = vmatprep.subr.bf16.mxu0 %v5616_v0  ;;  %v5646_v0 = vld [vmem:[#allocation4 + $0x164] ss:$8 sps:$4 sm:$0xff]  }
 0x149   :  { %2266 = vmatpush1.bf16.msra.mxu0 %v5614_v1  ;;  %v5644_v1 = vld [vmem:[#allocation4 + $0x160] ss:$8 sps:$4 sm:$0xff]  }
 0x14a   :  { %2267 = vmatprep.subr.bf16.mxu0 %v5619_v2  ;;  %v5649_v2 = vld [vmem:[#allocation4 + $0x174] ss:$8 sps:$4 sm:$0xff]  }
 0x14d   :  { %2268 = vmatpush1.bf16.msra.mxu0 %v5617_v3  ;;  %v5647_v3 = vld [vmem:[#allocation4 + $0x170] ss:$8 sps:$4 sm:$0xff]  }
 0x14e   :  { %2269 = vmatprep.subr.bf16.mxu0 %v5622_v4  ;;  %v5652_v4 = vld [vmem:[#allocation4 + $0x184] ss:$8 sps:$4 sm:$0xff]  }
 0x151   :  { %2270 = vmatpush1.bf16.msra.mxu0 %v5620_v5  ;;  %v5650_v5 = vld [vmem:[#allocation4 + $0x180] ss:$8 sps:$4 sm:$0xff]  }
 0x152   :  { %2271 = vmatprep.subr.bf16.mxu0 %v5625_v6  ;;  %v5655_v6 = vld [vmem:[#allocation4 + $0x194] ss:$8 sps:$4 sm:$0xff]  }
 0x155   :  { %2272 = vmatpush1.bf16.msra.mxu0 %v5623_v7  ;;  %v5653_v7 = vld [vmem:[#allocation4 + $0x190] ss:$8 sps:$4 sm:$0xff]  }
 0x156   :  { %2284 = vmatprep.subr.bf16.mxu0 %v5628_v8  ;;  %v5658_v8 = vld [vmem:[#allocation4 + $0x1a4] ss:$8 sps:$4 sm:$0xff]  }
 0x1eb   :  { %v1652_v25 = vpop.f32.mrb[0].mxu0  ;;  %v1824_v26 = vpop.f32.mrb[0].mxu1 }
 0x1ec   :  { %v5158_v27 = vadd.f32 %v1652_v25, %v316_v21  ;;  %v5162_v28 = vadd.f32 %v1824_v26, %v324_v22  ;;  %v1654_v29 = vpop.f32.mrb[1].mxu0  ;;  %v1826_v30 = vpop.f32.mrb[1].mxu1  ;;  %v5671_v25 = vld [vmem:[#allocation4 + $0x1f0] ss:$8 sps:$4 sm:$0xff]   ;;  %v5682_v26 = vld [vmem:[%s6550_s6 + $0x44] ss:$16 sps:$4 sm:$0xff]  }
 0x1ed   :  { %v5159_v31 = vadd.f32 %v1654_v29, %v320_v23  ;;  %v5163_v32 = vadd.f32 %v1826_v30, %v328_v24  ;;  %v1656_v33 = vpop.f32.mrb[2].mxu0  ;;  %v1828_v34 = vpop.f32.mrb[2].mxu1  ;;  %2562 = vmatprep.subr.bf16.mxu1 %v5682_v26  ;;  %v5683_v29 = vld [vmem:[%s6550_s6 + $0x60] ss:$16 sps:$4 sm:$0xff]   ;;  %v5688_v30 = vld [vmem:[%s6550_s6 + $0x84] ss:$16 sps:$4 sm:$0xff]  }
 0x1ee   :  { %v5160_v35 = vadd.f32 %v1656_v33, %v316_v21  ;;  %v5164_v36 = vadd.f32 %v1828_v34, %v324_v22  ;;  %v1658_v37 = vpop.f32.mrb[3].mxu0  ;;  %v1830_v38 = vpop.f32.mrb[3].mxu1  ;;  %v1833_v41 = vmax.f32 %v5158_v27, 0.0  ;;  %v1835_v42 = vmax.f32 %v5162_v28, 0.0  ;;  %v5665_v21 = vld [vmem:[#allocation4 + $0x1d0] ss:$8 sps:$4 sm:$0xff]  }
 0x1ef   :  { %v5161_v39 = vadd.f32 %v1658_v37, %v320_v23  ;;  %v5165_v40 = vadd.f32 %v1830_v38, %v328_v24  ;;  %v1834_v45 = vmax.f32 %v5159_v31, 0.0  ;;  %v1836_v46 = vmax.f32 %v5163_v32, 0.0  ;;  %v5670_v22 = vld [vmem:[#allocation4 + $0x1e4] ss:$8 sps:$4 sm:$0xff]   ;;  %v5668_v23 = vld [vmem:[#allocation4 + $0x1e0] ss:$8 sps:$4 sm:$0xff]  }
 0x1f0   :  { %v1837_v43 = vmax.f32 %v5160_v35, 0.0  ;;  %v1839_v44 = vmax.f32 %v5164_v36, 0.0  ;;  %v5673_v24 = vld [vmem:[#allocation4 + $0x1f4] ss:$8 sps:$4 sm:$0xff]   ;;  %v5680_v27 = vld [vmem:[%s6550_s6 + $0x40] ss:$16 sps:$4 sm:$0xff]  }
 0x1f1   :  { %v1838_v47 = vmax.f32 %v5161_v39, 0.0  ;;  %v1840_v48 = vmax.f32 %v5165_v40, 0.0  ;;  %2563 = vmatpush1.bf16.msra.mxu1 %v5680_v27  ;;  %v5685_v28 = vld [vmem:[%s6550_s6 + $0x64] ss:$16 sps:$4 sm:$0xff]   ;;  %v5686_v31 = vld [vmem:[%s6550_s6 + $0x80] ss:$16 sps:$4 sm:$0xff]  }
 0x1f2   :  { %v1841_v49 = vpack.c.bf16 %v1837_v43, %v1833_v41  ;;  %v6335_v50 = vpack.c.bf16 %v1839_v44, %v1835_v42  ;;  %2564 = vmatprep.subr.bf16.mxu1 %v5685_v28  ;;  %v5691_v32 = vld [vmem:[%s6550_s6 + $0xa4] ss:$16 sps:$4 sm:$0xff]   ;;  %v5689_v33 = vld [vmem:[%s6550_s6 + $0xa0] ss:$16 sps:$4 sm:$0xff]   ;;  %v5700_v38 = vld [vmem:[%s6550_s6 + $0xc] ss:$16 sps:$4 sm:$0xff]  }
 0x1f3   :  { %v1842_v51 = vpack.c.bf16 %v1838_v47, %v1834_v45  ;;  %v1844_v52 = vpack.c.bf16 %v1840_v48, %v1836_v46  ;;  %v5694_v34 = vld [vmem:[%s6550_s6 + $0xc4] ss:$16 sps:$4 sm:$0xff]   ;;  %v5692_v35 = vld [vmem:[%s6550_s6 + $0xc0] ss:$16 sps:$4 sm:$0xff]   ;;  %v5727_v40 = vld [vmem:[#allocation6 + $0xc] ss:$28 sps:$4 sm:$0xff]  }
 0x1f4   :  { %v5697_v36 = vld [vmem:[%s6550_s6 + $0xe4] ss:$16 sps:$4 sm:$0xff]   ;;  %v5695_v37 = vld [vmem:[%s6550_s6 + $0xe0] ss:$16 sps:$4 sm:$0xff]   ;;  %v5739_v43 = vld [vmem:[#allocation6 + $0x7c] ss:$28 sps:$4 sm:$0xff]  }
 0x1f5   :  { %2273 = vmatprep.mubr.bf16.mxu0 %v1842_v51  ;;  %2565 = vmatpush1.bf16.msra.mxu1 %v5683_v29  ;;  %v5725_v39 = vld [vmem:[#allocation6 + $0x8] ss:$28 sps:$4 sm:$0xff]   ;;  %v5731_v42 = vld [vmem:[#allocation6 + $0x40] ss:$28 sps:$4 sm:$0xff]   ;;  %v5737_v44 = vld [vmem:[#allocation6 + $0x78] ss:$28 sps:$4 sm:$0xff]  }
 0x1f6   :  { %2274 = vmatmul.mubr.bf16.vlgmr.msra.gmra.mrb[4].mxu0 %v1841_v49  ;;  %2566 = vmatprep.subr.bf16.mxu1 %v5688_v30  ;;  %v5733_v41 = vld [vmem:[#allocation6 + $0x44] ss:$28 sps:$4 sm:$0xff]   ;;  %v5745_v45 = vld [vmem:[#allocation6 + $0xb4] ss:$28 sps:$4 sm:$0xff]   ;;  %v5751_v47 = vld [vmem:[#allocation6 + $0xec] ss:$28 sps:$4 sm:$0xff]  }
 0x1f7   :  { %2285 = vmatpush1.bf16.msra.mxu0 %v5626_v53  ;;  %2316 = vmatprep.mubr.bf16.mxu0 %v1844_v52  ;;  %v5743_v46 = vld [vmem:[#allocation6 + $0xb0] ss:$28 sps:$4 sm:$0xff]   ;;  %v5749_v48 = vld [vmem:[#allocation6 + $0xe8] ss:$28 sps:$4 sm:$0xff]   ;;  %v5763_v51 = vld [vmem:[#allocation6 + $0x15c] ss:$28 sps:$4 sm:$0xff]  }
 0x1f8   :  { %2286 = vmatprep.subr.bf16.mxu0 %v5631_v54  ;;  %v5757_v49 = vld [vmem:[#allocation6 + $0x124] ss:$28 sps:$4 sm:$0xff]   ;;  %v5761_v52 = vld [vmem:[#allocation6 + $0x158] ss:$28 sps:$4 sm:$0xff]   ;;  %v5767_v54 = vld [vmem:[#allocation6 + $0x190] ss:$28 sps:$4 sm:$0xff]  }
 0x1f9   :  { %2567 = vmatpush1.bf16.msra.mxu1 %v5686_v31  ;;  %v5769_v53 = vld [vmem:[#allocation6 + $0x194] ss:$28 sps:$4 sm:$0xff]   ;;  %v2332_v26 = vld [vmem:[%s6545_s1 + $0x8] sm:$0xff] }
 0x1fa   :  { %2568 = vmatprep.subr.bf16.mxu1 %v5691_v32  ;;  %v5698_v32 = vld [vmem:[%s6550_s6 + $0x8] ss:$16 sps:$4 sm:$0xff]  }
 0x1fb   :  { %2287 = vmatpush1.bf16.msra.mxu0 %v5629_v55  ;;  %v5775_v55 = vld [vmem:[#allocation6 + $0x1cc] ss:$28 sps:$4 sm:$0xff]  }
 0x1fc   :  { %2288 = vmatprep.subr.bf16.mxu0 %v5634_v56  ;;  %v5773_v56 = vld [vmem:[#allocation6 + $0x1c8] ss:$28 sps:$4 sm:$0xff]  }
 0x1fd   :  { %2569 = vmatpush1.bf16.msra.mxu1 %v5689_v33 }
 0x1fe   :  { %2570 = vmatprep.subr.bf16.mxu1 %v5694_v34  ;;  %v5703_v34 = vld [vmem:[%s6550_s6 + $0x2c] ss:$16 sps:$4 sm:$0xff]  }
 0x1ff   :  { %2289 = vmatpush1.bf16.msra.mxu0 %v5632_v57  ;;  %v5781_v57 = vld [vmem:[#allocation6 + $0x204] ss:$28 sps:$4 sm:$0xff]  }
 0x200   :  { %2290 = vmatprep.subr.bf16.mxu0 %v5637_v58  ;;  %v5779_v58 = vld [vmem:[#allocation6 + $0x200] ss:$28 sps:$4 sm:$0xff]  }
 0x201   :  { %2571 = vmatpush1.bf16.msra.mxu1 %v5692_v35  ;;  %v5701_v35 = vld [vmem:[%s6550_s6 + $0x28] ss:$16 sps:$4 sm:$0xff]  }
 0x202   :  { %2572 = vmatprep.subr.bf16.mxu1 %v5697_v36  ;;  %v5706_v36 = vld [vmem:[%s6550_s6 + $0x4c] ss:$16 sps:$4 sm:$0xff]  }
 0x203   :  { %2291 = vmatpush1.bf16.msra.mxu0 %v5635_v59  ;;  %v5787_v59 = vld [vmem:[#allocation6 + $0x23c] ss:$28 sps:$4 sm:$0xff]  }
 0x204   :  { %2292 = vmatprep.subr.bf16.mxu0 %v5640_v60  ;;  %v5785_v60 = vld [vmem:[#allocation6 + $0x238] ss:$28 sps:$4 sm:$0xff]  }
 0x205   :  { %2573 = vmatpush1.bf16.msra.mxu1 %v5695_v37  ;;  %v5704_v37 = vld [vmem:[%s6550_s6 + $0x48] ss:$16 sps:$4 sm:$0xff]  }
 0x206   :  { %2601 = vmatprep.subr.bf16.mxu1 %v5700_v38  ;;  %v5709_v38 = vld [vmem:[%s6550_s6 + $0x6c] ss:$16 sps:$4 sm:$0xff]  }
 0x207   :  { %2293 = vmatpush1.bf16.msra.mxu0 %v5638_v61  ;;  %v5793_v61 = vld [vmem:[#allocation6 + $0x274] ss:$28 sps:$4 sm:$0xff]  }
 0x208   :  { %2294 = vmatprep.subr.bf16.mxu0 %v5643_v62  ;;  %v5791_v62 = vld [vmem:[#allocation6 + $0x270] ss:$28 sps:$4 sm:$0xff]  }
 0x20b   :  { %2295 = vmatpush1.bf16.msra.mxu0 %v5641_v63  ;;  %v5799_v63 = vld [vmem:[#allocation6 + $0x2ac] ss:$28 sps:$4 sm:$0xff]  }
 0x20c   :  { %2296 = vmatprep.subr.bf16.mxu0 %v5646_v0  ;;  %v5797_v0 = vld [vmem:[#allocation6 + $0x2a8] ss:$28 sps:$4 sm:$0xff]  }
 0x20f   :  { %2297 = vmatpush1.bf16.msra.mxu0 %v5644_v1  ;;  %v5805_v1 = vld [vmem:[#allocation6 + $0x2e4] ss:$28 sps:$4 sm:$0xff]  }
 0x210   :  { %2298 = vmatprep.subr.bf16.mxu0 %v5649_v2  ;;  %v5803_v2 = vld [vmem:[#allocation6 + $0x2e0] ss:$28 sps:$4 sm:$0xff]  }
 0x213   :  { %2299 = vmatpush1.bf16.msra.mxu0 %v5647_v3  ;;  %v1909_v3 = vld [vmem:[%s6549_s5] sm:$0x3] }
 0x214   :  { %2300 = vmatprep.subr.bf16.mxu0 %v5652_v4  ;;  %v1914_v4 = vrot.slane %v1909_v3, %v6317_v15 }
 0x217   :  { %2301 = vmatpush1.bf16.msra.mxu0 %v5650_v5  ;;  %v1918_v5 = vrot.slane %v1909_v3, %v6326_v19  ;;  %v5784_v3 = vld [vmem:[#allocation6 + $0x234] ss:$28 sps:$4 sm:$0xff]  }
 0x218   :  { %2302 = vmatprep.subr.bf16.mxu0 %v5655_v6 }
 0x21b   :  { %2303 = vmatpush1.bf16.msra.mxu0 %v5653_v7 }
 0x21c   :  { %2304 = vmatprep.subr.bf16.mxu0 %v5658_v8 }
 0x21f   :  { %2305 = vmatpush1.bf16.msra.mxu0 %v5656_v9 }
 0x220   :  { %2306 = vmatprep.subr.bf16.mxu0 %v5661_v10 }
 0x223   :  { %2307 = vmatpush1.bf16.msra.mxu0 %v5659_v11 }
 0x224   :  { %2308 = vmatprep.subr.bf16.mxu0 %v5664_v12 }
 0x227   :  { %2309 = vmatpush1.bf16.msra.mxu0 %v5662_v13 }
 0x228   :  { %2310 = vmatprep.subr.bf16.mxu0 %v5667_v17 }
 0x22b   :  { %2311 = vmatpush1.bf16.msra.mxu0 %v5665_v21 }
 0x22c   :  { %2312 = vmatprep.subr.bf16.mxu0 %v5670_v22 }
 0x22f   :  { %2313 = vmatpush1.bf16.msra.mxu0 %v5668_v23 }
 0x230   :  { %2314 = vmatprep.subr.bf16.mxu0 %v5673_v24  ;;  %v2331_v24 = vld [vmem:[%s6545_s1] sm:$0xff] }
 0x233   :  { %2315 = vmatpush1.bf16.msra.mxu0 %v5671_v25 }
 0x234   :  { %4187 = vmatprep.subr.bf16.mxu0 %v5727_v40  ;;  %v5710_v40 = vld [vmem:[%s6550_s6 + $0x88] ss:$16 sps:$4 sm:$0xff]  }
 0x236   :  { %2317 = vmatmul.mubr.bf16.vlgmr.msra.gmra.mrb[4].mxu0 %v6335_v50  ;;  %v5755_v50 = vld [vmem:[#allocation6 + $0x120] ss:$28 sps:$4 sm:$0xff]  }
 0x237   :  { %4188 = vmatpush1.bf16.msra.mxu0 %v5725_v39  ;;  %v5712_v39 = vld [vmem:[%s6550_s6 + $0x8c] ss:$16 sps:$4 sm:$0xff]  }
 0x238   :  { %4189 = vmatprep.subr.bf16.mxu0 %v5733_v41  ;;  %v5715_v41 = vld [vmem:[%s6550_s6 + $0xac] ss:$16 sps:$4 sm:$0xff]  }
 0x23b   :  { %4190 = vmatpush1.bf16.msra.mxu0 %v5731_v42  ;;  %v5713_v42 = vld [vmem:[%s6550_s6 + $0xa8] ss:$16 sps:$4 sm:$0xff]  }
 0x23c   :  { %4191 = vmatprep.subr.bf16.mxu0 %v5739_v43  ;;  %v5718_v43 = vld [vmem:[%s6550_s6 + $0xcc] ss:$16 sps:$4 sm:$0xff]  }
 0x23f   :  { %4192 = vmatpush1.bf16.msra.mxu0 %v5737_v44  ;;  %v5716_v44 = vld [vmem:[%s6550_s6 + $0xc8] ss:$16 sps:$4 sm:$0xff]  }
 0x240   :  { %4193 = vmatprep.subr.bf16.mxu0 %v5745_v45  ;;  %v5721_v45 = vld [vmem:[%s6550_s6 + $0xec] ss:$16 sps:$4 sm:$0xff]  }
 0x243   :  { %4194 = vmatpush1.bf16.msra.mxu0 %v5743_v46  ;;  %v5719_v46 = vld [vmem:[%s6550_s6 + $0xe8] ss:$16 sps:$4 sm:$0xff]  }
 0x244   :  { %4195 = vmatprep.subr.bf16.mxu0 %v5751_v47  ;;  %v5724_v47 = vld [vmem:[#allocation6 + $0x4] ss:$28 sps:$4 sm:$0xff]  }
 0x247   :  { %4196 = vmatpush1.bf16.msra.mxu0 %v5749_v48  ;;  %v5722_v48 = vld [vmem:[#allocation6] ss:$28 sps:$4 sm:$0xff]  }
 0x248   :  { %4197 = vmatprep.subr.bf16.mxu0 %v5757_v49  ;;  %v5730_v49 = vld [vmem:[#allocation6 + $0x3c] ss:$28 sps:$4 sm:$0xff]  }
 0x24b   :  { %4198 = vmatpush1.bf16.msra.mxu0 %v5755_v50  ;;  %v5728_v50 = vld [vmem:[#allocation6 + $0x38] ss:$28 sps:$4 sm:$0xff]  }
 0x24c   :  { %4199 = vmatprep.subr.bf16.mxu0 %v5763_v51  ;;  %v5736_v51 = vld [vmem:[#allocation6 + $0x74] ss:$28 sps:$4 sm:$0xff]  }
 0x24f   :  { %4200 = vmatpush1.bf16.msra.mxu0 %v5761_v52  ;;  %v5734_v52 = vld [vmem:[#allocation6 + $0x70] ss:$28 sps:$4 sm:$0xff]  }
 0x250   :  { %4201 = vmatprep.subr.bf16.mxu0 %v5769_v53  ;;  %v5742_v53 = vld [vmem:[#allocation6 + $0xac] ss:$28 sps:$4 sm:$0xff]  }
 0x253   :  { %4202 = vmatpush1.bf16.msra.mxu0 %v5767_v54  ;;  %v5740_v54 = vld [vmem:[#allocation6 + $0xa8] ss:$28 sps:$4 sm:$0xff]  }
 0x254   :  { %4203 = vmatprep.subr.bf16.mxu0 %v5775_v55  ;;  %v5748_v55 = vld [vmem:[#allocation6 + $0xe4] ss:$28 sps:$4 sm:$0xff]  }
 0x257   :  { %4204 = vmatpush1.bf16.msra.mxu0 %v5773_v56  ;;  %v5746_v56 = vld [vmem:[#allocation6 + $0xe0] ss:$28 sps:$4 sm:$0xff]  }
 0x258   :  { %4205 = vmatprep.subr.bf16.mxu0 %v5781_v57  ;;  %v5754_v57 = vld [vmem:[#allocation6 + $0x11c] ss:$28 sps:$4 sm:$0xff]  }
 0x25b   :  { %4206 = vmatpush1.bf16.msra.mxu0 %v5779_v58  ;;  %v5752_v58 = vld [vmem:[#allocation6 + $0x118] ss:$28 sps:$4 sm:$0xff]  }
 0x25c   :  { %4207 = vmatprep.subr.bf16.mxu0 %v5787_v59  ;;  %v5760_v59 = vld [vmem:[#allocation6 + $0x154] ss:$28 sps:$4 sm:$0xff]  }
 0x25f   :  { %4208 = vmatpush1.bf16.msra.mxu0 %v5785_v60  ;;  %v5758_v60 = vld [vmem:[#allocation6 + $0x150] ss:$28 sps:$4 sm:$0xff]  }
 0x260   :  { %4209 = vmatprep.subr.bf16.mxu0 %v5793_v61  ;;  %v5766_v61 = vld [vmem:[#allocation6 + $0x18c] ss:$28 sps:$4 sm:$0xff]  }
 0x263   :  { %4210 = vmatpush1.bf16.msra.mxu0 %v5791_v62  ;;  %v5764_v62 = vld [vmem:[#allocation6 + $0x188] ss:$28 sps:$4 sm:$0xff]  }
 0x264   :  { %4211 = vmatprep.subr.bf16.mxu0 %v5799_v63  ;;  %v5772_v63 = vld [vmem:[#allocation6 + $0x1c4] ss:$28 sps:$4 sm:$0xff]  }
 0x267   :  { %4212 = vmatpush1.bf16.msra.mxu0 %v5797_v0  ;;  %v5770_v0 = vld [vmem:[#allocation6 + $0x1c0] ss:$28 sps:$4 sm:$0xff]  }
 0x268   :  { %4213 = vmatprep.subr.bf16.mxu0 %v5805_v1  ;;  %v5778_v1 = vld [vmem:[#allocation6 + $0x1fc] ss:$28 sps:$4 sm:$0xff]  }
 0x26b   :  { %4214 = vmatpush1.bf16.msra.mxu0 %v5803_v2  ;;  %v5776_v2 = vld [vmem:[#allocation6 + $0x1f8] ss:$28 sps:$4 sm:$0xff]  }
 0x309   :  { %v2318_v6 = vpop.f32.mrb[4].mxu0 }
 0x30a   :  { %v5166_v7 = vadd.f32 %v2318_v6, %v1914_v4  ;;  %v2320_v8 = vpop.f32.mrb[5].mxu0  ;;  %v5788_v6 = vld [vmem:[#allocation6 + $0x268] ss:$28 sps:$4 sm:$0xff]  }
 0x30b   :  { %v5167_v9 = vadd.f32 %v2320_v8, %v1918_v5  ;;  %v2322_v10 = vpop.f32.mrb[6].mxu0  ;;  %v5794_v8 = vld [vmem:[#allocation6 + $0x2a0] ss:$28 sps:$4 sm:$0xff]  }
 0x30c   :  { %2327 = vst [vmem:[%s6555_s11] sm:$0xff] %v5166_v7  ;;  %v5168_v11 = vadd.f32 %v2322_v10, %v1914_v4  ;;  %v2324_v12 = vpop.f32.mrb[7].mxu0  ;;  %v5782_v4 = vld [vmem:[#allocation6 + $0x230] ss:$28 sps:$4 sm:$0xff]   ;;  %v5800_v10 = vld [vmem:[#allocation6 + $0x2d8] ss:$28 sps:$4 sm:$0xff]  }
 0x30d   :  { %2328 = vst [vmem:[%s6555_s11 + $0x8] sm:$0xff] %v5167_v9  ;;  %v2333_v13 = vmul.f32 0.5, %v5167_v9  ;;  %v5169_v17 = vadd.f32 %v2324_v12, %v1918_v5  ;;  %v5790_v5 = vld [vmem:[#allocation6 + $0x26c] ss:$28 sps:$4 sm:$0xff]   ;;  %v5802_v9 = vld [vmem:[#allocation6 + $0x2dc] ss:$28 sps:$4 sm:$0xff]  }
 0x30e   :  { %2329 = vst [vmem:[%s6555_s11 + $0x10] sm:$0xff] %v5168_v11  ;;  %v5811_v12 = vld [vmem:[#allocation6 + $0x31c] ss:$28 sps:$4 sm:$0xff]  }
 0x30f   :  { %v2335_v21 = vmul.f32 1.442695, %v2333_v13  ;;  %2330 = vst [vmem:[%s6555_s11 + $0x18] sm:$0xff] %v5169_v17  ;;  %v2334_v22 = vmul.f32 0.5, %v5169_v17  ;;  %v5806_v13 = vld [vmem:[#allocation6 + $0x310] ss:$28 sps:$4 sm:$0xff]   ;;  %4215 = vmatprep.subr.bf16.mxu0 %v5811_v12 }
 0x310   :  { %v5809_v17 = vld [vmem:[#allocation6 + $0x318] ss:$28 sps:$4 sm:$0xff]  }
 0x311   :  { %6042 = vpow2.f32 %v2335_v21  ;;  %v2337_v23 = vmul.f32 1.442695, %v2334_v22  ;;  %4216 = vmatpush1.bf16.msra.mxu0 %v5809_v17  ;;  %v5814_v21 = vld [vmem:[#allocation6 + $0x34c] ss:$28 sps:$4 sm:$0xff]   ;;  %v5817_v22 = vld [vmem:[#allocation6 + $0x354] ss:$28 sps:$4 sm:$0xff]  }
 0x312   :  { %4217 = vmatprep.subr.bf16.mxu0 %v5817_v22 }
 0x313   :  { %6044 = vpow2.f32 %v2337_v23  ;;  %v5812_v23 = vld [vmem:[#allocation6 + $0x348] ss:$28 sps:$4 sm:$0xff]  }
 0x31b   :  { %v6043_v25 = vpop.eup %6042 }
 0x31c   :  { %v2339_v27 = vmul.f32 %v6043_v25, %v2331_v24  ;;  %v5815_v24 = vld [vmem:[#allocation6 + $0x350] ss:$28 sps:$4 sm:$0xff]   ;;  %v5820_v25 = vld [vmem:[#allocation6 + $0x384] ss:$28 sps:$4 sm:$0xff]  }
 0x31d   :  { %v6045_v28 = vpop.eup %6044  ;;  %4218 = vmatpush1.bf16.msra.mxu0 %v5815_v24  ;;  %v5863_v24 = vld [vmem:[#allocation6 + $0x510] ss:$28 sps:$4 sm:$0xff]  }
 0x31e   :  { %v2340_v29 = vmul.f32 %v6045_v28, %v2332_v26  ;;  %v2341_v30 = vadd.f32 %v5166_v7, %v2339_v27  ;;  %v5796_v7 = vld [vmem:[#allocation6 + $0x2a4] ss:$28 sps:$4 sm:$0xff]   ;;  %v5823_v26 = vld [vmem:[#allocation6 + $0x38c] ss:$28 sps:$4 sm:$0xff]  }
 0x31f   :  { %4230 = vmatprep.subr.bf16.mxu0 %v5823_v26  ;;  %v6449_v27 = vld [vmem:[%s6551_s7] sm:$0xf] }
 0x320   :  { %v2342_v31 = vadd.f32 %v5168_v11, %v2340_v29  ;;  %v5808_v11 = vld [vmem:[#allocation6 + $0x314] ss:$28 sps:$4 sm:$0xff]   ;;  %v2381_v28 = vrot.slane %v6449_v27, %v6317_v15  ;;  %v2385_v29 = vrot.slane %v6449_v27, %v6326_v19 }
 0x322   :  { %v2343_v33 = vpack.c.bf16 %v2342_v31, %v2341_v30 }
 0x324   :  { %2591 = vmatmul.mubr.bf16.vlgmr.msra.gmra.mrb[4].mxu1 %v2343_v33 }
 0x325   :  { %2602 = vmatpush1.bf16.msra.mxu1 %v5698_v32  ;;  %2633 = vmatprep.mubr.bf16.mxu1 %v6181_v18  ;;  %v5707_v18 = vld [vmem:[%s6550_s6 + $0x68] ss:$16 sps:$4 sm:$0xff]  }
 0x326   :  { %2603 = vmatprep.subr.bf16.mxu1 %v5703_v34 }
 0x329   :  { %2604 = vmatpush1.bf16.msra.mxu1 %v5701_v35 }
 0x32a   :  { %2605 = vmatprep.subr.bf16.mxu1 %v5706_v36 }
 0x32d   :  { %2606 = vmatpush1.bf16.msra.mxu1 %v5704_v37 }
 0x32e   :  { %2607 = vmatprep.subr.bf16.mxu1 %v5709_v38 }
 0x331   :  { %2608 = vmatpush1.bf16.msra.mxu1 %v5707_v18 }
 0x332   :  { %2609 = vmatprep.subr.bf16.mxu1 %v5712_v39 }
 0x335   :  { %2610 = vmatpush1.bf16.msra.mxu1 %v5710_v40 }
 0x336   :  { %2611 = vmatprep.subr.bf16.mxu1 %v5715_v41 }
 0x339   :  { %2612 = vmatpush1.bf16.msra.mxu1 %v5713_v42 }
 0x33a   :  { %2613 = vmatprep.subr.bf16.mxu1 %v5718_v43  ;;  %v5818_v43 = vld [vmem:[#allocation6 + $0x380] ss:$28 sps:$4 sm:$0xff]  }
 0x33d   :  { %2614 = vmatpush1.bf16.msra.mxu1 %v5716_v44  ;;  %v5821_v44 = vld [vmem:[#allocation6 + $0x388] ss:$28 sps:$4 sm:$0xff]  }
 0x33e   :  { %2615 = vmatprep.subr.bf16.mxu1 %v5721_v45  ;;  %v5826_v45 = vld [vmem:[#allocation6 + $0x3bc] ss:$28 sps:$4 sm:$0xff]  }
 0x341   :  { %2616 = vmatpush1.bf16.msra.mxu1 %v5719_v46  ;;  %v5829_v46 = vld [vmem:[#allocation6 + $0x3c4] ss:$28 sps:$4 sm:$0xff]  }
 0x342   :  { %4101 = vmatprep.subr.bf16.mxu1 %v5724_v47  ;;  %v5824_v47 = vld [vmem:[#allocation6 + $0x3b8] ss:$28 sps:$4 sm:$0xff]  }
 0x344   :  { %2634 = vmatmul.mubr.bf16.vlgmr.msra.gmra.mrb[8].mxu1 %v2343_v33 }
 0x345   :  { %4102 = vmatpush1.bf16.msra.mxu1 %v5722_v48  ;;  %v5827_v48 = vld [vmem:[#allocation6 + $0x3c0] ss:$28 sps:$4 sm:$0xff]  }
 0x346   :  { %4103 = vmatprep.subr.bf16.mxu1 %v5730_v49  ;;  %v5832_v49 = vld [vmem:[#allocation6 + $0x3f4] ss:$28 sps:$4 sm:$0xff]  }
 0x349   :  { %4104 = vmatpush1.bf16.msra.mxu1 %v5728_v50  ;;  %v5835_v50 = vld [vmem:[#allocation6 + $0x3fc] ss:$28 sps:$4 sm:$0xff]  }
 0x34a   :  { %4105 = vmatprep.subr.bf16.mxu1 %v5736_v51  ;;  %v5830_v51 = vld [vmem:[#allocation6 + $0x3f0] ss:$28 sps:$4 sm:$0xff]  }
 0x34d   :  { %4106 = vmatpush1.bf16.msra.mxu1 %v5734_v52  ;;  %v5833_v52 = vld [vmem:[#allocation6 + $0x3f8] ss:$28 sps:$4 sm:$0xff]  }
 0x34e   :  { %4107 = vmatprep.subr.bf16.mxu1 %v5742_v53  ;;  %v5838_v53 = vld [vmem:[#allocation6 + $0x42c] ss:$28 sps:$4 sm:$0xff]  }
 0x351   :  { %4108 = vmatpush1.bf16.msra.mxu1 %v5740_v54  ;;  %v5841_v54 = vld [vmem:[#allocation6 + $0x434] ss:$28 sps:$4 sm:$0xff]  }
 0x352   :  { %4109 = vmatprep.subr.bf16.mxu1 %v5748_v55  ;;  %v5836_v55 = vld [vmem:[#allocation6 + $0x428] ss:$28 sps:$4 sm:$0xff]  }
 0x355   :  { %4110 = vmatpush1.bf16.msra.mxu1 %v5746_v56  ;;  %v5839_v56 = vld [vmem:[#allocation6 + $0x430] ss:$28 sps:$4 sm:$0xff]  }
 0x356   :  { %4111 = vmatprep.subr.bf16.mxu1 %v5754_v57  ;;  %v5844_v57 = vld [vmem:[#allocation6 + $0x464] ss:$28 sps:$4 sm:$0xff]  }
 0x359   :  { %4112 = vmatpush1.bf16.msra.mxu1 %v5752_v58  ;;  %v5847_v58 = vld [vmem:[#allocation6 + $0x46c] ss:$28 sps:$4 sm:$0xff]  }
 0x35a   :  { %4113 = vmatprep.subr.bf16.mxu1 %v5760_v59  ;;  %v5842_v59 = vld [vmem:[#allocation6 + $0x460] ss:$28 sps:$4 sm:$0xff]  }
 0x35d   :  { %4114 = vmatpush1.bf16.msra.mxu1 %v5758_v60  ;;  %v5845_v60 = vld [vmem:[#allocation6 + $0x468] ss:$28 sps:$4 sm:$0xff]  }
 0x35e   :  { %4115 = vmatprep.subr.bf16.mxu1 %v5766_v61  ;;  %v5850_v61 = vld [vmem:[#allocation6 + $0x49c] ss:$28 sps:$4 sm:$0xff]  }
 0x361   :  { %4116 = vmatpush1.bf16.msra.mxu1 %v5764_v62  ;;  %v5853_v62 = vld [vmem:[#allocation6 + $0x4a4] ss:$28 sps:$4 sm:$0xff]  }
 0x362   :  { %4117 = vmatprep.subr.bf16.mxu1 %v5772_v63  ;;  %v5848_v63 = vld [vmem:[#allocation6 + $0x498] ss:$28 sps:$4 sm:$0xff]  }
 0x365   :  { %4118 = vmatpush1.bf16.msra.mxu1 %v5770_v0  ;;  %v5851_v0 = vld [vmem:[#allocation6 + $0x4a0] ss:$28 sps:$4 sm:$0xff]  }
 0x366   :  { %4119 = vmatprep.subr.bf16.mxu1 %v5778_v1  ;;  %v2389_v1 = vrot.slane %v6449_v27, %v6320_v16 }
 0x369   :  { %4120 = vmatpush1.bf16.msra.mxu1 %v5776_v2  ;;  %v5856_v2 = vld [vmem:[#allocation6 + $0x4d4] ss:$28 sps:$4 sm:$0xff]  }
 0x36a   :  { %4121 = vmatprep.subr.bf16.mxu1 %v5784_v3  ;;  %v5859_v3 = vld [vmem:[#allocation6 + $0x4dc] ss:$28 sps:$4 sm:$0xff]  }
 0x36d   :  { %4122 = vmatpush1.bf16.msra.mxu1 %v5782_v4  ;;  %v2393_v4 = vrot.slane %v6449_v27, %v6329_v20  ;;  %v5868_v27 = vld [vmem:[#allocation6 + $0x544] ss:$28 sps:$4 sm:$0xff]  }
 0x36e   :  { %4123 = vmatprep.subr.bf16.mxu1 %v5790_v5 }
 0x371   :  { %4124 = vmatpush1.bf16.msra.mxu1 %v5788_v6  ;;  %v5854_v6 = vld [vmem:[#allocation6 + $0x4d0] ss:$28 sps:$4 sm:$0xff]  }
 0x372   :  { %4125 = vmatprep.subr.bf16.mxu1 %v5796_v7  ;;  %v5857_v7 = vld [vmem:[#allocation6 + $0x4d8] ss:$28 sps:$4 sm:$0xff]  }
 0x375   :  { %4126 = vmatpush1.bf16.msra.mxu1 %v5794_v8 }
 0x376   :  { %4127 = vmatprep.subr.bf16.mxu1 %v5802_v9 }
 0x379   :  { %4128 = vmatpush1.bf16.msra.mxu1 %v5800_v10  ;;  %v5862_v10 = vld [vmem:[#allocation6 + $0x50c] ss:$28 sps:$4 sm:$0xff]  }
 0x37a   :  { %4129 = vmatprep.subr.bf16.mxu1 %v5808_v11  ;;  %v5865_v11 = vld [vmem:[#allocation6 + $0x514] ss:$28 sps:$4 sm:$0xff]  }
 0x37d   :  { %4130 = vmatpush1.bf16.msra.mxu1 %v5806_v13 }
 0x37e   :  { %4131 = vmatprep.subr.bf16.mxu1 %v5814_v21 }
 0x381   :  { %4132 = vmatpush1.bf16.msra.mxu1 %v5812_v23  ;;  %v5860_v23 = vld [vmem:[#allocation6 + $0x508] ss:$28 sps:$4 sm:$0xff]  }
 0x382   :  { %4144 = vmatprep.subr.bf16.mxu1 %v5820_v25 }
 0x3f7   :  { %v2592_v30 = vpop.f32.mrb[4].mxu1 }
 0x3f8   :  { %v2593_v31 = vadd.f32 %v2592_v30, %v2381_v28  ;;  %v2594_v32 = vpop.f32.mrb[5].mxu1 }
 0x3f9   :  { %v2595_v33 = vadd.f32 %v2594_v32, %v2385_v29  ;;  %v2596_v34 = vpop.f32.mrb[6].mxu1 }
 0x3fa   :  { %v2597_v35 = vadd.f32 %v2596_v34, %v2381_v28  ;;  %v2598_v36 = vpop.f32.mrb[7].mxu1  ;;  %v2644_v38 = vmax.f32 %v2593_v31, 0.0  ;;  %v5871_v28 = vld [vmem:[#allocation6 + $0x54c] ss:$28 sps:$4 sm:$0xff]  }
 0x3fb   :  { %v2599_v37 = vadd.f32 %v2598_v36, %v2385_v29  ;;  %v2645_v39 = vmax.f32 %v2595_v33, 0.0  ;;  %v5866_v33 = vld [vmem:[#allocation6 + $0x540] ss:$28 sps:$4 sm:$0xff]   ;;  %v5869_v34 = vld [vmem:[#allocation6 + $0x548] ss:$28 sps:$4 sm:$0xff]  }
 0x3fc   :  { %v2648_v18 = vmax.f32 %v2597_v35, 0.0  ;;  %v5874_v35 = vld [vmem:[#allocation6 + $0x57c] ss:$28 sps:$4 sm:$0xff]   ;;  %v5877_v36 = vld [vmem:[#allocation6 + $0x584] ss:$28 sps:$4 sm:$0xff]  }
 0x3fd   :  { %v2649_v40 = vmax.f32 %v2599_v37, 0.0  ;;  %v5872_v37 = vld [vmem:[#allocation6 + $0x578] ss:$28 sps:$4 sm:$0xff]  }
 0x3fe   :  { %v6455_v41 = vpack.c.bf16 %v2648_v18, %v2644_v38  ;;  %v5875_v38 = vld [vmem:[#allocation6 + $0x580] ss:$28 sps:$4 sm:$0xff]   ;;  %v5880_v18 = vld [vmem:[#allocation6 + $0x5b4] ss:$28 sps:$4 sm:$0xff]  }
 0x3ff   :  { %v6457_v42 = vpack.c.bf16 %v2649_v40, %v2645_v39  ;;  %v5883_v39 = vld [vmem:[#allocation6 + $0x5bc] ss:$28 sps:$4 sm:$0xff]   ;;  %v5878_v40 = vld [vmem:[#allocation6 + $0x5b0] ss:$28 sps:$4 sm:$0xff]  }
 0x401   :  { %4133 = vmatprep.mubr.bf16.mxu1 %v6457_v42  ;;  %4219 = vmatprep.mubr.bf16.mxu0 %v6457_v42 }
 0x402   :  { %4134 = vmatmul.mubr.bf16.vlgmr.msra.gmra.mrb[12].mxu1 %v6455_v41  ;;  %4220 = vmatmul.mubr.bf16.vlgmr.msra.gmra.mrb[8].mxu0 %v6455_v41 }
 0x403   :  { %4145 = vmatpush1.bf16.msra.mxu1 %v5818_v43  ;;  %4231 = vmatpush1.bf16.msra.mxu0 %v5821_v44  ;;  %v5881_v43 = vld [vmem:[#allocation6 + $0x5b8] ss:$28 sps:$4 sm:$0xff]   ;;  %v5886_v44 = vld [vmem:[#allocation6 + $0x5ec] ss:$28 sps:$4 sm:$0xff]  }
 0x404   :  { %4146 = vmatprep.subr.bf16.mxu1 %v5826_v45  ;;  %4232 = vmatprep.subr.bf16.mxu0 %v5829_v46  ;;  %v5889_v45 = vld [vmem:[#allocation6 + $0x5f4] ss:$28 sps:$4 sm:$0xff]   ;;  %v5884_v46 = vld [vmem:[#allocation6 + $0x5e8] ss:$28 sps:$4 sm:$0xff]  }
 0x407   :  { %4147 = vmatpush1.bf16.msra.mxu1 %v5824_v47  ;;  %4233 = vmatpush1.bf16.msra.mxu0 %v5827_v48  ;;  %v5887_v47 = vld [vmem:[#allocation6 + $0x5f0] ss:$28 sps:$4 sm:$0xff]   ;;  %v5892_v48 = vld [vmem:[#allocation6 + $0x624] ss:$28 sps:$4 sm:$0xff]  }
 0x408   :  { %4148 = vmatprep.subr.bf16.mxu1 %v5832_v49  ;;  %4234 = vmatprep.subr.bf16.mxu0 %v5835_v50  ;;  %v5895_v49 = vld [vmem:[#allocation6 + $0x62c] ss:$28 sps:$4 sm:$0xff]   ;;  %v5890_v50 = vld [vmem:[#allocation6 + $0x620] ss:$28 sps:$4 sm:$0xff]  }
 0x40b   :  { %4149 = vmatpush1.bf16.msra.mxu1 %v5830_v51  ;;  %4235 = vmatpush1.bf16.msra.mxu0 %v5833_v52  ;;  %v5893_v51 = vld [vmem:[#allocation6 + $0x628] ss:$28 sps:$4 sm:$0xff]   ;;  %v5898_v52 = vld [vmem:[#allocation6 + $0x65c] ss:$28 sps:$4 sm:$0xff]  }
 0x40c   :  { %4150 = vmatprep.subr.bf16.mxu1 %v5838_v53  ;;  %4236 = vmatprep.subr.bf16.mxu0 %v5841_v54  ;;  %v5901_v53 = vld [vmem:[#allocation6 + $0x664] ss:$28 sps:$4 sm:$0xff]   ;;  %v5896_v54 = vld [vmem:[#allocation6 + $0x658] ss:$28 sps:$4 sm:$0xff]  }
 0x40f   :  { %4151 = vmatpush1.bf16.msra.mxu1 %v5836_v55  ;;  %4237 = vmatpush1.bf16.msra.mxu0 %v5839_v56  ;;  %v5899_v55 = vld [vmem:[#allocation6 + $0x660] ss:$28 sps:$4 sm:$0xff]   ;;  %v5904_v56 = vld [vmem:[#allocation6 + $0x694] ss:$28 sps:$4 sm:$0xff]  }
 0x410   :  { %4152 = vmatprep.subr.bf16.mxu1 %v5844_v57  ;;  %4238 = vmatprep.subr.bf16.mxu0 %v5847_v58  ;;  %v5907_v57 = vld [vmem:[#allocation6 + $0x69c] ss:$28 sps:$4 sm:$0xff]   ;;  %v5902_v58 = vld [vmem:[#allocation6 + $0x690] ss:$28 sps:$4 sm:$0xff]  }
 0x413   :  { %4153 = vmatpush1.bf16.msra.mxu1 %v5842_v59  ;;  %4239 = vmatpush1.bf16.msra.mxu0 %v5845_v60  ;;  %v5905_v59 = vld [vmem:[#allocation6 + $0x698] ss:$28 sps:$4 sm:$0xff]   ;;  %v5910_v60 = vld [vmem:[#allocation6 + $0x6cc] ss:$28 sps:$4 sm:$0xff]  }
 0x414   :  { %4154 = vmatprep.subr.bf16.mxu1 %v5850_v61  ;;  %4240 = vmatprep.subr.bf16.mxu0 %v5853_v62  ;;  %v5913_v61 = vld [vmem:[#allocation6 + $0x6d4] ss:$28 sps:$4 sm:$0xff]   ;;  %v5908_v62 = vld [vmem:[#allocation6 + $0x6c8] ss:$28 sps:$4 sm:$0xff]  }
 0x417   :  { %v2635_v5 = vpop.f32.mrb[8].mxu1  ;;  %4155 = vmatpush1.bf16.msra.mxu1 %v5848_v63  ;;  %4241 = vmatpush1.bf16.msra.mxu0 %v5851_v0  ;;  %v5911_v63 = vld [vmem:[#allocation6 + $0x6d0] ss:$28 sps:$4 sm:$0xff]  }
 0x418   :  { %v2636_v8 = vadd.f32 %v2635_v5, %v2389_v1  ;;  %v2637_v9 = vpop.f32.mrb[9].mxu1  ;;  %4156 = vmatprep.subr.bf16.mxu1 %v5856_v2  ;;  %4242 = vmatprep.subr.bf16.mxu0 %v5859_v3  ;;  %v5916_v0 = vld [vmem:[#allocation6 + $0x14] ss:$28 sps:$4 sm:$0xff]  }
 0x419   :  { %v2638_v12 = vadd.f32 %v2637_v9, %v2393_v4  ;;  %v2639_v13 = vpop.f32.mrb[10].mxu1  ;;  %v5914_v2 = vld [vmem:[#allocation6 + $0x10] ss:$28 sps:$4 sm:$0xff]   ;;  %v5918_v3 = vld [vmem:[#allocation6 + $0x18] ss:$28 sps:$4 sm:$0xff]  }
 0x41a   :  { %v2640_v17 = vadd.f32 %v2639_v13, %v2389_v1  ;;  %v2641_v21 = vpop.f32.mrb[11].mxu1  ;;  %v2646_v25 = vmax.f32 %v2636_v8, 0.0  ;;  %v5917_v1 = vld [vmem:[#allocation6 + $0x1d8] ss:$28 sps:$4 sm:$0xff]   ;;  %v5922_v5 = vld [vmem:[#allocation6 + $0x210] ss:$28 sps:$4 sm:$0xff]  }
 0x41b   :  { %v2642_v22 = vadd.f32 %v2641_v21, %v2393_v4  ;;  %4157 = vmatpush1.bf16.msra.mxu1 %v5854_v6  ;;  %4243 = vmatpush1.bf16.msra.mxu0 %v5857_v7  ;;  %v2647_v29 = vmax.f32 %v2638_v12, 0.0  ;;  %v5921_v4 = vld [vmem:[#allocation6 + $0x4c] ss:$28 sps:$4 sm:$0xff]   ;;  %v5926_v8 = vld [vmem:[#allocation6 + $0x84] ss:$28 sps:$4 sm:$0xff]  }
 0x41c   :  { %v2650_v26 = vmax.f32 %v2640_v17, 0.0  ;;  %4158 = vmatprep.subr.bf16.mxu1 %v5862_v10  ;;  %4244 = vmatprep.subr.bf16.mxu0 %v5865_v11  ;;  %v5919_v6 = vld [vmem:[#allocation6 + $0x48] ss:$28 sps:$4 sm:$0xff]   ;;  %v5923_v7 = vld [vmem:[#allocation6 + $0x50] ss:$28 sps:$4 sm:$0xff]  }
 0x41d   :  { %v2651_v30 = vmax.f32 %v2642_v22, 0.0  ;;  %v5927_v9 = vld [vmem:[#allocation6 + $0x248] ss:$28 sps:$4 sm:$0xff]   ;;  %v5924_v10 = vld [vmem:[#allocation6 + $0x80] ss:$28 sps:$4 sm:$0xff]  }
 0x41e   :  { %v6467_v31 = vpack.c.bf16 %v2650_v26, %v2646_v25  ;;  %v5928_v11 = vld [vmem:[#allocation6 + $0x88] ss:$28 sps:$4 sm:$0xff]   ;;  %v5931_v12 = vld [vmem:[#allocation6 + $0xbc] ss:$28 sps:$4 sm:$0xff]   ;;  %v5936_v22 = vld [vmem:[#allocation6 + $0xf4] ss:$28 sps:$4 sm:$0xff]  }
 0x41f   :  { %v6469_v32 = vpack.c.bf16 %v2651_v30, %v2647_v29  ;;  %4159 = vmatpush1.bf16.msra.mxu1 %v5860_v23  ;;  %4245 = vmatpush1.bf16.msra.mxu0 %v5863_v24  ;;  %v5932_v13 = vld [vmem:[#allocation6 + $0x280] ss:$28 sps:$4 sm:$0xff]   ;;  %v5929_v17 = vld [vmem:[#allocation6 + $0xb8] ss:$28 sps:$4 sm:$0xff]   ;;  %v5934_v23 = vld [vmem:[#allocation6 + $0xf0] ss:$28 sps:$4 sm:$0xff]  }
 0x420   :  { %4160 = vmatprep.subr.bf16.mxu1 %v5868_v27  ;;  %4246 = vmatprep.subr.bf16.mxu0 %v5871_v28  ;;  %v5933_v21 = vld [vmem:[#allocation6 + $0xc0] ss:$28 sps:$4 sm:$0xff]   ;;  %v5938_v24 = vld [vmem:[#allocation6 + $0xf8] ss:$28 sps:$4 sm:$0xff]   ;;  %v5941_v25 = vld [vmem:[#allocation6 + $0x12c] ss:$28 sps:$4 sm:$0xff]  }
 0x421   :  { %4176 = vmatprep.mubr.bf16.mxu1 %v6469_v32  ;;  %4262 = vmatprep.mubr.bf16.mxu0 %v6469_v32  ;;  %v5942_v26 = vld [vmem:[#allocation6 + $0x2f0] ss:$28 sps:$4 sm:$0xff]   ;;  %v5939_v27 = vld [vmem:[#allocation6 + $0x128] ss:$28 sps:$4 sm:$0xff]  }
 0x422   :  { %v5943_v28 = vld [vmem:[#allocation6 + $0x130] ss:$28 sps:$4 sm:$0xff]   ;;  %v5946_v29 = vld [vmem:[#allocation6 + $0x164] ss:$28 sps:$4 sm:$0xff]  }
 0x423   :  { %4161 = vmatpush1.bf16.msra.mxu1 %v5866_v33  ;;  %4247 = vmatpush1.bf16.msra.mxu0 %v5869_v34  ;;  %v5947_v30 = vld [vmem:[#allocation6 + $0x328] ss:$28 sps:$4 sm:$0xff]   ;;  %v5944_v33 = vld [vmem:[#allocation6 + $0x160] ss:$28 sps:$4 sm:$0xff]  }
 0x424   :  { %4162 = vmatprep.subr.bf16.mxu1 %v5874_v35  ;;  %4248 = vmatprep.subr.bf16.mxu0 %v5877_v36  ;;  %v5948_v34 = vld [vmem:[#allocation6 + $0x168] ss:$28 sps:$4 sm:$0xff]   ;;  %v5951_v35 = vld [vmem:[#allocation6 + $0x19c] ss:$28 sps:$4 sm:$0xff]  }
 0x425   :  { %v5952_v36 = vld [vmem:[#allocation6 + $0x360] ss:$28 sps:$4 sm:$0xff]  }
 0x427   :  { %4163 = vmatpush1.bf16.msra.mxu1 %v5872_v37  ;;  %4249 = vmatpush1.bf16.msra.mxu0 %v5875_v38  ;;  %v5949_v37 = vld [vmem:[#allocation6 + $0x198] ss:$28 sps:$4 sm:$0xff]   ;;  %v5953_v38 = vld [vmem:[#allocation6 + $0x1a0] ss:$28 sps:$4 sm:$0xff]  }
 0x428   :  { %4164 = vmatprep.subr.bf16.mxu1 %v5880_v18  ;;  %4250 = vmatprep.subr.bf16.mxu0 %v5883_v39  ;;  %v5956_v18 = vld [vmem:[#allocation6 + $0x1d4] ss:$28 sps:$4 sm:$0xff]  }
 0x429   :  { %v5957_v39 = vld [vmem:[#allocation6 + $0x558] ss:$28 sps:$4 sm:$0xff]  }
 0x42b   :  { %4165 = vmatpush1.bf16.msra.mxu1 %v5878_v40  ;;  %4251 = vmatpush1.bf16.msra.mxu0 %v5881_v43  ;;  %v5954_v40 = vld [vmem:[#allocation6 + $0x1d0] ss:$28 sps:$4 sm:$0xff]   ;;  %v5958_v43 = vld [vmem:[#allocation6 + $0x398] ss:$28 sps:$4 sm:$0xff]  }
 0x42c   :  { %4166 = vmatprep.subr.bf16.mxu1 %v5886_v44  ;;  %4252 = vmatprep.subr.bf16.mxu0 %v5889_v45  ;;  %v5961_v44 = vld [vmem:[#allocation6 + $0x20c] ss:$28 sps:$4 sm:$0xff]  }
 0x42d   :  { %v5962_v45 = vld [vmem:[#allocation6 + $0x590] ss:$28 sps:$4 sm:$0xff]  }
 0x42f   :  { %4167 = vmatpush1.bf16.msra.mxu1 %v5884_v46  ;;  %4253 = vmatpush1.bf16.msra.mxu0 %v5887_v47  ;;  %v5959_v46 = vld [vmem:[#allocation6 + $0x208] ss:$28 sps:$4 sm:$0xff]   ;;  %v5963_v47 = vld [vmem:[#allocation6 + $0x3d0] ss:$28 sps:$4 sm:$0xff]  }
 0x430   :  { %4168 = vmatprep.subr.bf16.mxu1 %v5892_v48  ;;  %4254 = vmatprep.subr.bf16.mxu0 %v5895_v49  ;;  %v5966_v48 = vld [vmem:[#allocation6 + $0x244] ss:$28 sps:$4 sm:$0xff]  }
 0x431   :  { %v5967_v49 = vld [vmem:[#allocation6 + $0x5c8] ss:$28 sps:$4 sm:$0xff]  }
 0x433   :  { %4169 = vmatpush1.bf16.msra.mxu1 %v5890_v50  ;;  %4255 = vmatpush1.bf16.msra.mxu0 %v5893_v51  ;;  %v5964_v50 = vld [vmem:[#allocation6 + $0x240] ss:$28 sps:$4 sm:$0xff]   ;;  %v5968_v51 = vld [vmem:[#allocation6 + $0x408] ss:$28 sps:$4 sm:$0xff]  }
 0x434   :  { %4170 = vmatprep.subr.bf16.mxu1 %v5898_v52  ;;  %4256 = vmatprep.subr.bf16.mxu0 %v5901_v53  ;;  %v5971_v52 = vld [vmem:[#allocation6 + $0x27c] ss:$28 sps:$4 sm:$0xff]  }
 0x435   :  { %v5972_v53 = vld [vmem:[#allocation6 + $0x600] ss:$28 sps:$4 sm:$0xff]  }
 0x437   :  { %4171 = vmatpush1.bf16.msra.mxu1 %v5896_v54  ;;  %4257 = vmatpush1.bf16.msra.mxu0 %v5899_v55  ;;  %v5969_v54 = vld [vmem:[#allocation6 + $0x278] ss:$28 sps:$4 sm:$0xff]   ;;  %v5973_v55 = vld [vmem:[#allocation6 + $0x440] ss:$28 sps:$4 sm:$0xff]  }
 0x438   :  { %4172 = vmatprep.subr.bf16.mxu1 %v5904_v56  ;;  %4258 = vmatprep.subr.bf16.mxu0 %v5907_v57  ;;  %v5976_v56 = vld [vmem:[#allocation6 + $0x2b4] ss:$28 sps:$4 sm:$0xff]  }
 0x439   :  { %v5977_v57 = vld [vmem:[#allocation6 + $0x638] ss:$28 sps:$4 sm:$0xff]  }
 0x43b   :  { %4173 = vmatpush1.bf16.msra.mxu1 %v5902_v58  ;;  %4259 = vmatpush1.bf16.msra.mxu0 %v5905_v59  ;;  %v5974_v58 = vld [vmem:[#allocation6 + $0x2b0] ss:$28 sps:$4 sm:$0xff]   ;;  %v5978_v59 = vld [vmem:[#allocation6 + $0x478] ss:$28 sps:$4 sm:$0xff]  }
 0x43c   :  { %4174 = vmatprep.subr.bf16.mxu1 %v5910_v60  ;;  %4260 = vmatprep.subr.bf16.mxu0 %v5913_v61  ;;  %v5981_v60 = vld [vmem:[#allocation6 + $0x2ec] ss:$28 sps:$4 sm:$0xff]  }
 0x43d   :  { %v5982_v61 = vld [vmem:[#allocation6 + $0x670] ss:$28 sps:$4 sm:$0xff]  }
 0x43f   :  { %4175 = vmatpush1.bf16.msra.mxu1 %v5908_v62  ;;  %4261 = vmatpush1.bf16.msra.mxu0 %v5911_v63  ;;  %v5979_v62 = vld [vmem:[#allocation6 + $0x2e8] ss:$28 sps:$4 sm:$0xff]   ;;  %v5983_v63 = vld [vmem:[#allocation6 + $0x4b0] ss:$28 sps:$4 sm:$0xff]  }
 0x440   :  { %4273 = vmatprep.subr.bf16.mxu1 %v5916_v0  ;;  %5114 = vmatprep.subr.bf16.mxu0 %v5917_v1  ;;  %v5986_v0 = vld [vmem:[#allocation6 + $0x324] ss:$28 sps:$4 sm:$0xff]  }
 0x441   :  { %v5987_v1 = vld [vmem:[#allocation6 + $0x6a8] ss:$28 sps:$4 sm:$0xff]  }
 0x442   :  { %4177 = vmatmul.mubr.bf16.vlgmr.msra.gmra.mrb[12].mxu1 %v6467_v31  ;;  %4263 = vmatmul.mubr.bf16.vlgmr.msra.gmra.mrb[8].mxu0 %v6467_v31 }
 0x443   :  { %4274 = vmatpush1.bf16.msra.mxu1 %v5914_v2  ;;  %4305 = vmatprep.mubr.bf16.mxu1 %v6457_v42  ;;  %v5984_v2 = vld [vmem:[#allocation6 + $0x320] ss:$28 sps:$4 sm:$0xff]  }
 0x444   :  { %5115 = vmatpush3.bf16.msra.mxu0 %v5918_v3  ;;  %4391 = vmatprep.mubr.bf16.mxu0 %v6457_v42  ;;  %v5937_v42 = vld [vmem:[#allocation6 + $0x2b8] ss:$28 sps:$4 sm:$0xff]   ;;  %v5988_v3 = vld [vmem:[#allocation6 + $0x4e8] ss:$28 sps:$4 sm:$0xff]  }
 0x445   :  { %4275 = vmatprep.subr.bf16.mxu1 %v5921_v4  ;;  %5116 = vmatprep.subr.bf16.mxu0 %v5922_v5  ;;  %v5991_v4 = vld [vmem:[#allocation6 + $0x35c] ss:$28 sps:$4 sm:$0xff]  }
 0x446   :  { %v5992_v5 = vld [vmem:[#allocation6 + $0x6e0] ss:$28 sps:$4 sm:$0xff]  }
 0x447   :  { %4276 = vmatpush1.bf16.msra.mxu1 %v5919_v6  ;;  %v5989_v6 = vld [vmem:[#allocation6 + $0x358] ss:$28 sps:$4 sm:$0xff]  }
 0x448   :  { %5117 = vmatpush3.bf16.msra.mxu0 %v5923_v7  ;;  %4277 = vmatprep.subr.bf16.mxu1 %v5926_v8  ;;  %v5993_v7 = vld [vmem:[#allocation6 + $0x520] ss:$28 sps:$4 sm:$0xff]   ;;  %v5996_v8 = vld [vmem:[#allocation6 + $0x394] ss:$28 sps:$4 sm:$0xff]  }
 0x449   :  { %5118 = vmatprep.subr.bf16.mxu0 %v5927_v9  ;;  %v5994_v9 = vld [vmem:[#allocation6 + $0x390] ss:$28 sps:$4 sm:$0xff]  }
 0x44b   :  { %4278 = vmatpush1.bf16.msra.mxu1 %v5924_v10  ;;  %v5999_v10 = vld [vmem:[#allocation6 + $0x3cc] ss:$28 sps:$4 sm:$0xff]  }
 0x44c   :  { %5119 = vmatpush3.bf16.msra.mxu0 %v5928_v11  ;;  %4279 = vmatprep.subr.bf16.mxu1 %v5931_v12  ;;  %v5997_v11 = vld [vmem:[#allocation6 + $0x3c8] ss:$28 sps:$4 sm:$0xff]  }
 0x44d   :  { %5120 = vmatprep.subr.bf16.mxu0 %v5932_v13  ;;  %v6002_v12 = vld [vmem:[#allocation6 + $0x404] ss:$28 sps:$4 sm:$0xff]  }
 0x44e   :  { %v6000_v13 = vld [vmem:[#allocation6 + $0x400] ss:$28 sps:$4 sm:$0xff]  }
 0x44f   :  { %4280 = vmatpush1.bf16.msra.mxu1 %v5929_v17  ;;  %v6005_v17 = vld [vmem:[#allocation6 + $0x43c] ss:$28 sps:$4 sm:$0xff]  }
 0x450   :  { %5121 = vmatpush3.bf16.msra.mxu0 %v5933_v21  ;;  %4281 = vmatprep.subr.bf16.mxu1 %v5936_v22  ;;  %v6003_v21 = vld [vmem:[#allocation6 + $0x438] ss:$28 sps:$4 sm:$0xff]  }
 0x451   :  { %5122 = vmatprep.subr.bf16.mxu0 %v5937_v42  ;;  %v6008_v22 = vld [vmem:[#allocation6 + $0x474] ss:$28 sps:$4 sm:$0xff]  }
 0x452   :  { %v6006_v42 = vld [vmem:[#allocation6 + $0x470] ss:$28 sps:$4 sm:$0xff]  }
 0x453   :  { %4282 = vmatpush1.bf16.msra.mxu1 %v5934_v23  ;;  %v6009_v23 = vld [vmem:[#allocation6 + $0x4a8] ss:$28 sps:$4 sm:$0xff]  }
 0x454   :  { %5123 = vmatpush3.bf16.msra.mxu0 %v5938_v24  ;;  %4283 = vmatprep.subr.bf16.mxu1 %v5941_v25  ;;  %v6014_v24 = vld [vmem:[#allocation6 + $0x4e4] ss:$28 sps:$4 sm:$0xff]   ;;  %v6017_v25 = vld [vmem:[#allocation6 + $0x51c] ss:$28 sps:$4 sm:$0xff]  }
 0x455   :  { %5124 = vmatprep.subr.bf16.mxu0 %v5942_v26  ;;  %v6015_v26 = vld [vmem:[#allocation6 + $0x518] ss:$28 sps:$4 sm:$0xff]  }
 0x457   :  { %4284 = vmatpush1.bf16.msra.mxu1 %v5939_v27  ;;  %v6020_v27 = vld [vmem:[#allocation6 + $0x554] ss:$28 sps:$4 sm:$0xff]  }
 0x458   :  { %5125 = vmatpush3.bf16.msra.mxu0 %v5943_v28  ;;  %4285 = vmatprep.subr.bf16.mxu1 %v5946_v29  ;;  %v6018_v28 = vld [vmem:[#allocation6 + $0x550] ss:$28 sps:$4 sm:$0xff]  }
 0x459   :  { %5126 = vmatprep.subr.bf16.mxu0 %v5947_v30  ;;  %v6023_v29 = vld [vmem:[#allocation6 + $0x58c] ss:$28 sps:$4 sm:$0xff]  }
 0x45a   :  { %v6021_v30 = vld [vmem:[#allocation6 + $0x588] ss:$28 sps:$4 sm:$0xff]  }
 0x45b   :  { %4286 = vmatpush1.bf16.msra.mxu1 %v5944_v33  ;;  %v6026_v33 = vld [vmem:[#allocation6 + $0x5c4] ss:$28 sps:$4 sm:$0xff]  }
 0x45c   :  { %5127 = vmatpush3.bf16.msra.mxu0 %v5948_v34  ;;  %4287 = vmatprep.subr.bf16.mxu1 %v5951_v35  ;;  %v6024_v34 = vld [vmem:[#allocation6 + $0x5c0] ss:$28 sps:$4 sm:$0xff]  }
 0x45d   :  { %5128 = vmatprep.subr.bf16.mxu0 %v5952_v36  ;;  %v6029_v35 = vld [vmem:[#allocation6 + $0x5fc] ss:$28 sps:$4 sm:$0xff]  }
 0x45e   :  { %v6027_v36 = vld [vmem:[#allocation6 + $0x5f8] ss:$28 sps:$4 sm:$0xff]  }
 0x45f   :  { %4288 = vmatpush1.bf16.msra.mxu1 %v5949_v37  ;;  %v6032_v37 = vld [vmem:[#allocation6 + $0x634] ss:$28 sps:$4 sm:$0xff]  }
 0x460   :  { %5129 = vmatpush3.bf16.msra.mxu0 %v5953_v38  ;;  %4289 = vmatprep.subr.bf16.mxu1 %v5956_v18  ;;  %v6030_v38 = vld [vmem:[#allocation6 + $0x630] ss:$28 sps:$4 sm:$0xff]  }
 0x461   :  { %5136 = vmatprep.subr.bf16.mxu0 %v5957_v39  ;;  %v6035_v18 = vld [vmem:[#allocation6 + $0x66c] ss:$28 sps:$4 sm:$0xff]  }
 0x462   :  { %v6033_v39 = vld [vmem:[#allocation6 + $0x668] ss:$28 sps:$4 sm:$0xff]  }
 0x463   :  { %4392 = vmatmul.mubr.bf16.vlgmr.msra.gmra.mrb[12].mxu0 %v6455_v41  ;;  %4290 = vmatpush1.bf16.msra.mxu1 %v5954_v40  ;;  %v6038_v40 = vld [vmem:[#allocation6 + $0x6a4] ss:$28 sps:$4 sm:$0xff]  }
 0x464   :  { %5137 = vmatpush3.bf16.msra.mxu0 %v5958_v43  ;;  %4432 = vmatprep.mubr.bf16.mxu0 %v6469_v32  ;;  %v6036_v43 = vld [vmem:[#allocation6 + $0x6a0] ss:$28 sps:$4 sm:$0xff]  }
 0x465   :  { %4291 = vmatprep.subr.bf16.mxu1 %v5961_v44  ;;  %5138 = vmatprep.subr.bf16.mxu0 %v5962_v45  ;;  %v6041_v44 = vld [vmem:[#allocation6 + $0x6dc] ss:$28 sps:$4 sm:$0xff]  }
 0x466   :  { %v6039_v45 = vld [vmem:[#allocation6 + $0x6d8] ss:$28 sps:$4 sm:$0xff]  }
 0x467   :  { %4292 = vmatpush1.bf16.msra.mxu1 %v5959_v46  ;;  %v6486_v46 = vld [vmem:[%s6553_s9] sm:$0xff] }
 0x468   :  { %5139 = vmatpush3.bf16.msra.mxu0 %v5963_v47  ;;  %4293 = vmatprep.subr.bf16.mxu1 %v5966_v48  ;;  %v2917_v47 = vrot.slane %v6486_v46, %v6317_v15  ;;  %v2925_v48 = vrot.slane %v6486_v46, %v6320_v16 }
 0x469   :  { %5140 = vmatprep.subr.bf16.mxu0 %v5967_v49  ;;  %v2921_v49 = vrot.slane %v6486_v46, %v6326_v19 }
 0x46b   :  { %4294 = vmatpush1.bf16.msra.mxu1 %v5964_v50  ;;  %v2929_v50 = vrot.slane %v6486_v46, %v6329_v20 }
 0x46c   :  { %5141 = vmatpush3.bf16.msra.mxu0 %v5968_v51  ;;  %4295 = vmatprep.subr.bf16.mxu1 %v5971_v52 }
 0x46d   :  { %5142 = vmatprep.subr.bf16.mxu0 %v5972_v53 }
 0x46f   :  { %4296 = vmatpush1.bf16.msra.mxu1 %v5969_v54 }
 0x470   :  { %5143 = vmatpush3.bf16.msra.mxu0 %v5973_v55  ;;  %4297 = vmatprep.subr.bf16.mxu1 %v5976_v56 }
 0x471   :  { %5144 = vmatprep.subr.bf16.mxu0 %v5977_v57 }
 0x473   :  { %4298 = vmatpush1.bf16.msra.mxu1 %v5974_v58 }
 0x474   :  { %5145 = vmatpush3.bf16.msra.mxu0 %v5978_v59  ;;  %4299 = vmatprep.subr.bf16.mxu1 %v5981_v60 }
 0x475   :  { %5146 = vmatprep.subr.bf16.mxu0 %v5982_v61 }
 0x477   :  { %4300 = vmatpush1.bf16.msra.mxu1 %v5979_v62 }
 0x478   :  { %5147 = vmatpush3.bf16.msra.mxu0 %v5983_v63  ;;  %4301 = vmatprep.subr.bf16.mxu1 %v5986_v0 }
 0x479   :  { %5148 = vmatprep.subr.bf16.mxu0 %v5987_v1 }
 0x47b   :  { %4302 = vmatpush1.bf16.msra.mxu1 %v5984_v2 }
 0x47c   :  { %5149 = vmatpush3.bf16.msra.mxu0 %v5988_v3  ;;  %4303 = vmatprep.subr.bf16.mxu1 %v5991_v4 }
 0x47d   :  { %5150 = vmatprep.subr.bf16.mxu0 %v5992_v5 }
 0x47f   :  { %4304 = vmatpush1.bf16.msra.mxu1 %v5989_v6 }
 0x480   :  { %5151 = vmatpush3.bf16.msra.mxu0 %v5993_v7  ;;  %4316 = vmatprep.subr.bf16.mxu1 %v5996_v8 }
 0x482   :  { %4306 = vmatmul.mubr.bf16.vlgmr.msra.gmra.mrb[16].mxu1 %v6455_v41  ;;  %v6011_v41 = vld [vmem:[#allocation6 + $0x4ac] ss:$28 sps:$4 sm:$0xff]  }
 0x483   :  { %4433 = vmatmul.mubr.bf16.vlgmr.msra.gmra.mrb[16].mxu0 %v6467_v31  ;;  %4317 = vmatpush1.bf16.msra.mxu1 %v5994_v9 }
 0x484   :  { %4348 = vmatprep.mubr.bf16.mxu1 %v6469_v32  ;;  %4318 = vmatprep.subr.bf16.mxu1 %v5999_v10  ;;  %v6012_v32 = vld [vmem:[#allocation6 + $0x4e0] ss:$28 sps:$4 sm:$0xff]  }
 0x487   :  { %4319 = vmatpush1.bf16.msra.mxu1 %v5997_v11 }
 0x488   :  { %4320 = vmatprep.subr.bf16.mxu1 %v6002_v12 }
 0x48b   :  { %4321 = vmatpush1.bf16.msra.mxu1 %v6000_v13 }
 0x48c   :  { %4322 = vmatprep.subr.bf16.mxu1 %v6005_v17 }
 0x48f   :  { %4323 = vmatpush1.bf16.msra.mxu1 %v6003_v21 }
 0x490   :  { %4324 = vmatprep.subr.bf16.mxu1 %v6008_v22 }
 0x493   :  { %4325 = vmatpush1.bf16.msra.mxu1 %v6006_v42 }
 0x494   :  { %4326 = vmatprep.subr.bf16.mxu1 %v6011_v41 }
 0x497   :  { %4327 = vmatpush1.bf16.msra.mxu1 %v6009_v23 }
 0x498   :  { %4328 = vmatprep.subr.bf16.mxu1 %v6014_v24 }
 0x49b   :  { %4329 = vmatpush1.bf16.msra.mxu1 %v6012_v32 }
 0x49c   :  { %4330 = vmatprep.subr.bf16.mxu1 %v6017_v25 }
 0x49f   :  { %4331 = vmatpush1.bf16.msra.mxu1 %v6015_v26 }
 0x4a0   :  { %4332 = vmatprep.subr.bf16.mxu1 %v6020_v27 }
 0x4a3   :  { %4333 = vmatpush1.bf16.msra.mxu1 %v6018_v28 }
 0x4a4   :  { %4334 = vmatprep.subr.bf16.mxu1 %v6023_v29 }
 0x4a7   :  { %4335 = vmatpush1.bf16.msra.mxu1 %v6021_v30 }
 0x4a8   :  { %4336 = vmatprep.subr.bf16.mxu1 %v6026_v33 }
 0x4ab   :  { %4337 = vmatpush1.bf16.msra.mxu1 %v6024_v34 }
 0x4ac   :  { %4338 = vmatprep.subr.bf16.mxu1 %v6029_v35 }
 0x4af   :  { %4339 = vmatpush1.bf16.msra.mxu1 %v6027_v36 }
 0x4b0   :  { %4340 = vmatprep.subr.bf16.mxu1 %v6032_v37 }
 0x4b3   :  { %4341 = vmatpush1.bf16.msra.mxu1 %v6030_v38 }
 0x4b4   :  { %4342 = vmatprep.subr.bf16.mxu1 %v6035_v18 }
 0x4b7   :  { %4343 = vmatpush1.bf16.msra.mxu1 %v6033_v39 }
 0x4b8   :  { %4344 = vmatprep.subr.bf16.mxu1 %v6038_v40  ;;  %v2940_v40 = vsub.s32 6, %v6314_v14 }
 0x4bb   :  { %4345 = vmatpush1.bf16.msra.mxu1 %v6036_v43  ;;  %v2941_v43 = vrot.slane %v6486_v46, %v2940_v40 }
 0x4bc   :  { %4346 = vmatprep.subr.bf16.mxu1 %v6041_v44 }
 0x4bf   :  { %4347 = vmatpush1.bf16.msra.mxu1 %v6039_v45 }
 0x4c2   :  { %4349 = vmatmul.mubr.bf16.vlgmr.msra.gmra.mrb[16].mxu1 %v6467_v31 }
 0x515   :  { %v4178_v51 = vpop.f32.mrb[12].mxu1  ;;  %v4264_v52 = vpop.f32.mrb[8].mxu0 }
 0x516   :  { %v5170_v31 = vadd.f32 %v4178_v51, %v2917_v47  ;;  %v5174_v53 = vadd.f32 %v4264_v52, %v2925_v48  ;;  %v4180_v54 = vpop.f32.mrb[13].mxu1  ;;  %v4266_v55 = vpop.f32.mrb[9].mxu0 }
 0x517   :  { %v5171_v56 = vadd.f32 %v4180_v54, %v2921_v49  ;;  %v5175_v57 = vadd.f32 %v4266_v55, %v2929_v50  ;;  %v4182_v58 = vpop.f32.mrb[14].mxu1  ;;  %v4268_v59 = vpop.f32.mrb[10].mxu0 }
 0x518   :  { %v5100_v15 = vmul.f32 -1.442695, %v5170_v31  ;;  %v5102_v60 = vmul.f32 -1.442695, %v5174_v53  ;;  %v5172_v61 = vadd.f32 %v4182_v58, %v2917_v47  ;;  %v5176_v16 = vadd.f32 %v4268_v59, %v2925_v48  ;;  %v4184_v62 = vpop.f32.mrb[15].mxu1  ;;  %v4270_v63 = vpop.f32.mrb[11].mxu0 }
 0x519   :  { %v5101_v19 = vmul.f32 -1.442695, %v5171_v56  ;;  %v5103_v0 = vmul.f32 -1.442695, %v5175_v57  ;;  %v5173_v1 = vadd.f32 %v4184_v62, %v2921_v49  ;;  %v5177_v20 = vadd.f32 %v4270_v63, %v2929_v50 }
 0x51a   :  { %6046 = vpow2.f32 %v5100_v15  ;;  %v5107_v2 = vmul.f32 -1.442695, %v5172_v61  ;;  %v5109_v3 = vmul.f32 -1.442695, %v5176_v16  ;;  %v2932_v61 = vsub.s32 4, %v6314_v14 }
 0x51b   :  { %6048 = vpow2.f32 %v5102_v60  ;;  %v5108_v4 = vmul.f32 -1.442695, %v5173_v1  ;;  %v5110_v5 = vmul.f32 -1.442695, %v5177_v20  ;;  %v2936_v16 = vsub.s32 5, %v6314_v14 }
 0x51c   :  { %6050 = vpow2.f32 %v5101_v19  ;;  %v2933_v62 = vrot.slane %v6486_v46, %v2932_v61 }
 0x51d   :  { %6052 = vpow2.f32 %v5103_v0  ;;  %v2937_v63 = vrot.slane %v6486_v46, %v2936_v16 }
 0x51e   :  { %6054 = vpow2.f32 %v5107_v2 }
 0x51f   :  { %6056 = vpow2.f32 %v5109_v3 }
 0x520   :  { %6058 = vpow2.f32 %v5108_v4 }
 0x521   :  { %6060 = vpow2.f32 %v5110_v5 }
 0x524   :  { %v6047_v6 = vpop.eup %6046 }
 0x525   :  { %v6049_v7 = vpop.eup %6048  ;;  %v4483_v8 = vadd.f32 1.0, %v6047_v6 }
 0x526   :  { %v6051_v9 = vpop.eup %6050  ;;  %v4485_v10 = vadd.f32 1.0, %v6049_v7 }
 0x527   :  { %v6053_v11 = vpop.eup %6052  ;;  %6062 = vrcp.f32 %v4483_v8  ;;  %v4484_v12 = vadd.f32 1.0, %v6051_v9 }
 0x528   :  { %v6055_v13 = vpop.eup %6054  ;;  %6064 = vrcp.f32 %v4485_v10  ;;  %v4486_v17 = vadd.f32 1.0, %v6053_v11 }
 0x529   :  { %v6057_v21 = vpop.eup %6056  ;;  %6066 = vrcp.f32 %v4484_v12  ;;  %v4490_v22 = vadd.f32 1.0, %v6055_v13 }
 0x52a   :  { %v6059_v42 = vpop.eup %6058  ;;  %6068 = vrcp.f32 %v4486_v17  ;;  %v4492_v41 = vadd.f32 1.0, %v6057_v21 }
 0x52b   :  { %v6061_v23 = vpop.eup %6060  ;;  %6070 = vrcp.f32 %v4490_v22  ;;  %v4491_v24 = vadd.f32 1.0, %v6059_v42 }
 0x52c   :  { %6072 = vrcp.f32 %v4492_v41  ;;  %v4493_v32 = vadd.f32 1.0, %v6061_v23 }
 0x52d   :  { %6074 = vrcp.f32 %v4491_v24 }
 0x52e   :  { %6076 = vrcp.f32 %v4493_v32 }
 0x531   :  { %v6063_v25 = vpop.eup %6062 }
 0x532   :  { %v6065_v26 = vpop.eup %6064  ;;  %4525 = vst [vmem:[%s6554_s10] sm:$0xff] %v6063_v25 }
 0x533   :  { %v6067_v27 = vpop.eup %6066  ;;  %4527 = vst [vmem:[%s6554_s10 + $0x10] sm:$0xff] %v6065_v26 }
 0x534   :  { %v6069_v28 = vpop.eup %6068  ;;  %4526 = vst [vmem:[%s6554_s10 + $0x8] sm:$0xff] %v6067_v27 }
 0x535   :  { %v6071_v29 = vpop.eup %6070  ;;  %4528 = vst [vmem:[%s6554_s10 + $0x18] sm:$0xff] %v6069_v28 }
 0x536   :  { %v6073_v30 = vpop.eup %6072  ;;  %4532 = vst [vmem:[%s6554_s10 + $0x38] sm:$0xff] %v6071_v29  ;;  %v5130_v33 = vpop.f32.mrb[12].mxu0 }
 0x537   :  { %v6075_v34 = vpop.eup %6074  ;;  %4534 = vst [vmem:[%s6554_s10 + $0x48] sm:$0xff] %v6073_v30  ;;  %v5131_v35 = vpop.f32.mrb[13].mxu0 }
 0x538   :  { %v6077_v36 = vpop.eup %6076  ;;  %4533 = vst [vmem:[%s6554_s10 + $0x40] sm:$0xff] %v6075_v34  ;;  %v5132_v37 = vadd.f32 %v5131_v35, %v5130_v33  ;;  %v5133_v38 = vpop.f32.mrb[14].mxu0 }
 0x539   :  { %4535 = vst [vmem:[%s6554_s10 + $0x50] sm:$0xff] %v6077_v36  ;;  %v5134_v18 = vpop.f32.mrb[15].mxu0 }
 0x53a   :  { %v5135_v39 = vadd.f32 %v5134_v18, %v5133_v38  ;;  %v4394_v47 = vadd.f32 %v5132_v37, %v2941_v43 }
 0x53c   :  { %v4397_v51 = vadd.f32 %v5135_v39, %v2941_v43 }
 0x556   :  { %v5152_v44 = vpop.f32.mrb[16].mxu0 }
 0x557   :  { %v5153_v45 = vpop.f32.mrb[17].mxu0 }
 0x558   :  { %v5154_v48 = vadd.f32 %v5153_v45, %v5152_v44  ;;  %v5155_v49 = vpop.f32.mrb[18].mxu0 }
 0x559   :  { %v5156_v50 = vpop.f32.mrb[19].mxu0 }
 0x55a   :  { %v4435_v52 = vadd.f32 %v5154_v48, %v4394_v47  ;;  %v5157_v31 = vadd.f32 %v5156_v50, %v5155_v49 }
 0x55c   :  { %v5106_v53 = vmul.f32 -1.442695, %v4435_v52  ;;  %v4438_v54 = vadd.f32 %v5157_v31, %v4397_v51 }
 0x55e   :  { %6078 = vpow2.f32 %v5106_v53  ;;  %v5113_v55 = vmul.f32 -1.442695, %v4438_v54 }
 0x560   :  { %6080 = vpow2.f32 %v5113_v55 }
 0x568   :  { %v6079_v56 = vpop.eup %6078 }
 0x569   :  { %v4489_v57 = vadd.f32 1.0, %v6079_v56 }
 0x56a   :  { %v6081_v58 = vpop.eup %6080 }
 0x56b   :  { %6082 = vrcp.f32 %v4489_v57  ;;  %v4496_v59 = vadd.f32 1.0, %v6081_v58 }
 0x56d   :  { %6084 = vrcp.f32 %v4496_v59 }
 0x575   :  { %v6083_v15 = vpop.eup %6082 }
 0x576   :  { %4531 = vst [vmem:[%s6554_s10 + $0x30] sm:$0xff] %v6083_v15 }
 0x577   :  { %v6085_v60 = vpop.eup %6084 }
 0x578   :  { %4538 = vst [vmem:[%s6554_s10 + $0x68] sm:$0xff] %v6085_v60 }
 0x595   :  { %v4350_v19 = vpop.f32.mrb[16].mxu1 }
 0x596   :  { %v5178_v0 = vadd.f32 %v4350_v19, %v2933_v62  ;;  %v4352_v1 = vpop.f32.mrb[17].mxu1 }
 0x597   :  { %v5179_v20 = vadd.f32 %v4352_v1, %v2937_v63  ;;  %v4354_v2 = vpop.f32.mrb[18].mxu1 }
 0x598   :  { %v5104_v3 = vmul.f32 -1.442695, %v5178_v0  ;;  %v5180_v4 = vadd.f32 %v4354_v2, %v2933_v62  ;;  %v4356_v5 = vpop.f32.mrb[19].mxu1 }
 0x599   :  { %v5105_v6 = vmul.f32 -1.442695, %v5179_v20  ;;  %v5181_v7 = vadd.f32 %v4356_v5, %v2937_v63 }
 0x59a   :  { %6086 = vpow2.f32 %v5104_v3  ;;  %v5111_v8 = vmul.f32 -1.442695, %v5180_v4 }
 0x59b   :  { %6088 = vpow2.f32 %v5105_v6  ;;  %v5112_v9 = vmul.f32 -1.442695, %v5181_v7 }
 0x59c   :  { %6090 = vpow2.f32 %v5111_v8 }
 0x59d   :  { %6092 = vpow2.f32 %v5112_v9 }
 0x5a4   :  { %v6087_v14 = vpop.eup %6086 }
 0x5a5   :  { %v6089_v10 = vpop.eup %6088  ;;  %v4487_v11 = vadd.f32 1.0, %v6087_v14 }
 0x5a6   :  { %v6091_v46 = vpop.eup %6090  ;;  %v4488_v12 = vadd.f32 1.0, %v6089_v10 }
 0x5a7   :  { %v6093_v13 = vpop.eup %6092  ;;  %6094 = vrcp.f32 %v4487_v11  ;;  %v4494_v17 = vadd.f32 1.0, %v6091_v46 }
 0x5a8   :  { %6096 = vrcp.f32 %v4488_v12  ;;  %v4495_v21 = vadd.f32 1.0, %v6093_v13 }
 0x5a9   :  { %6098 = vrcp.f32 %v4494_v17 }
 0x5aa   :  { %6100 = vrcp.f32 %v4495_v21 }
 0x5b1   :  { %v6095_v22 = vpop.eup %6094 }
 0x5b2   :  { %v6097_v42 = vpop.eup %6096  ;;  %4529 = vst [vmem:[%s6554_s10 + $0x20] sm:$0xff] %v6095_v22 }
 0x5b3   :  { %v6099_v41 = vpop.eup %6098  ;;  %4530 = vst [vmem:[%s6554_s10 + $0x28] sm:$0xff] %v6097_v42 }
 0x5b4   :  { %v6101_v23 = vpop.eup %6100  ;;  %4536 = vst [vmem:[%s6554_s10 + $0x58] sm:$0xff] %v6099_v41 }
 0x5b5   :  { %4537 = vst [vmem:[%s6554_s10 + $0x60] sm:$0xff] %v6101_v23 }
 0x5b6   :  { %4547 = vsyncpa [#allocation3], 1 }
 0x5b7   :  { %4548 = vsyncpa [#allocation5], 1 }

</bundles_post_ra>
